<compile_context>
chip_gen: v6e
topology: v6e:2x2x1
jax: 0.10.0
libtpu: 0.0.40
codegen_flags: <defaults>
</compile_context>

<pallas_src>
import functools

import jax
import jax.numpy as jnp
from jax.experimental import pallas as pl
from jax.experimental.pallas import tpu as pltpu


def _round_up(x, m):
    return ((x + m - 1) // m) * m


def _cdiv(a, b):
    return (a + b - 1) // b


# ------------------- kernel 1: encoder + LM trunk (batch-tiled) -------------

def _encoder_kernel(art_ref,       # (TBa, D, Lp)  article embeddings, Lp lane-dense
                    ctx_enc_ref,   # (TBa, W*D)    flattened title-ctx emb (encoder table)
                    ctx_lm_ref,    # (TBa, W*D)    flattened title-ctx emb (LM table)
                    enc_w_ref,     # (W*D, D)
                    enc_b_ref,     # (1, D)
                    lm_w_ref,      # (W*D, H)
                    lm_b_ref,      # (1, H)
                    attn_ref,      # out: (TBa, Lp) f32
                    h_ref,         # out: (TBa, H)  bf16
                    enc_ref,       # out: (TBa, D)  bf16
                    *, article_len):
    art = art_ref[...]                                                  # (TBa, D, Lp)

    # encoder context query (proper MXU matmul: TBa x W*D @ W*D x D)
    q = (jnp.dot(ctx_enc_ref[...], enc_w_ref[...],
                 preferred_element_type=jnp.float32) + enc_b_ref[...])  # (TBa, D)

    # attention scores on the VPU + XLU (no per-row MXU pushes):
    #   scores[b, l] = sum_d q[b, d] * art[b, d, l]
    scores = jnp.sum(art * q[:, :, None], axis=1)                       # (TBa, Lp)

    # mask padded article positions (l >= article_len)
    lane = jax.lax.broadcasted_iota(jnp.int32, scores.shape, 1)
    scores = jnp.where(lane < article_len, scores, -1e30)

    m = jnp.max(scores, axis=-1, keepdims=True)
    e = jnp.exp(scores - m)
    denom = jnp.sum(e, axis=-1, keepdims=True)
    # EUP reciprocal (its own VLIW slot) + one Newton step for full f32 accuracy
    r = pl.reciprocal(denom, approx=True)
    r = r * (2.0 - denom * r)
    attn = e * r                                                        # (TBa, Lp)
    attn_ref[...] = attn

    # enc[b, d] = sum_l attn[b, l] * art[b, d, l]   (VPU mul + XLU lane reduce)
    enc = jnp.sum(art * attn[:, None, :], axis=2)                       # (TBa, D)
    enc_ref[...] = enc.astype(enc_ref.dtype)

    # LM trunk
    h = jnp.tanh(jnp.dot(ctx_lm_ref[...], lm_w_ref[...],
                         preferred_element_type=jnp.float32) + lm_b_ref[...])
    h_ref[...] = h.astype(h_ref.dtype)                                  # (TBa, H)


# ---- kernel 2 (pass 1): vocab-sharded, vocab-tiled online logsumexp only ----

def _lse_kernel(h_ref,      # (TB, H)      bf16
                enc_ref,    # (TB, D)      bf16
                wh_ref,     # (H, TV)      bf16
                we_ref,     # (D, TV)      bf16
                b_ref,      # (1, TV)      f32
                lse_ref,    # out: (TB, 1) f32   (shard dim squeezed)
                m_sc, l_sc):  # VMEM scratch (TB, 1) f32 each
    j = pl.program_id(2)

    @pl.when(j == 0)
    def _():
        m_sc[...] = jnp.full_like(m_sc, -jnp.inf)
        l_sc[...] = jnp.zeros_like(l_sc)

    logits = (jnp.dot(h_ref[...], wh_ref[...], preferred_element_type=jnp.float32)
              + jnp.dot(enc_ref[...], we_ref[...], preferred_element_type=jnp.float32)
              + b_ref[...])

    m_prev = m_sc[...]
    m_new = jnp.maximum(m_prev, jnp.max(logits, axis=-1, keepdims=True))
    l_sc[...] = (l_sc[...] * jnp.exp(m_prev - m_new)
                 + jnp.sum(jnp.exp(logits - m_new), axis=-1, keepdims=True))
    m_sc[...] = m_new

    @pl.when(j == pl.num_programs(2) - 1)
    def _():
        lse_ref[...] = m_sc[...] + jnp.log(l_sc[...])   # per-shard partial lse


# ---- kernel 3 (pass 2): recompute logits and write logp directly ------------

def _logp_kernel(h_ref, enc_ref, wh_ref, we_ref, b_ref, lse_ref, logp_ref):
    logits = (jnp.dot(h_ref[...], wh_ref[...], preferred_element_type=jnp.float32)
              + jnp.dot(enc_ref[...], we_ref[...], preferred_element_type=jnp.float32)
              + b_ref[...])
    # f32 logp output (module semantics); switch to bf16 if consumers tolerate it
    # to halve the dominant store stream on v5e.
    logp_ref[...] = (logits - lse_ref[...]).astype(logp_ref.dtype)


# ------------------------------ geometry helpers ------------------------------

def _vocab_geometry(V, tile_v_req, num_vocab_shards):
    """Pick (Vp, tile_v, n_shards, tiles_per_shard) keeping Vp - V small."""
    Vp128 = _round_up(V, 128)
    n_shards = num_vocab_shards if Vp128 >= num_vocab_shards * 128 else 1
    tile_v_req = max(128, _round_up(tile_v_req, 128))
    n_tiles = _round_up(_cdiv(Vp128, tile_v_req), n_shards)
    tile_v = _round_up(_cdiv(Vp128, n_tiles), 128)
    Vp = n_tiles * tile_v
    return Vp, tile_v, n_shards, n_tiles // n_shards


def _batch_geometry(B):
    if B <= 128:
        Bp = _round_up(B, 16)           # bf16-friendly sublane multiple
        tile_b = Bp
    else:
        tile_b = 64                     # never round_up(B, 128)
        Bp = _round_up(B, tile_b)
    tile_ba = 32 if Bp % 32 == 0 else 16   # stage-A batch tile (divides Bp)
    return Bp, tile_b, tile_ba


# --------------------------------- forward -----------------------------------

def _forward_impl(article_ids, title_ctx_ids, params, prepped, *,
                  V, Vp, tile_v, n_shards, tiles_per_shard):
    """article_ids: (B, L) int32; title_ctx_ids: (B, W) int32."""
    B, L = article_ids.shape
    W = title_ctx_ids.shape[1]
    D = params["enc_w"].shape[1]
    H = params["lm_w"].shape[1]
    WD = W * D

    Bp, tile_b, tile_ba = _batch_geometry(B)
    Lp = _round_up(L, 128)                        # lane-dense attention axis

    art_ids_p = jnp.pad(article_ids, ((0, Bp - B), (0, Lp - L)))
    ctx_ids_p = jnp.pad(title_ctx_ids, ((0, Bp - B), (0, 0)))

    # embedding gathers -- plain JAX glue.  art is laid out (Bp, D, Lp) so the
    # padded article length (multiple of 128) is the lane axis inside kernel 1.
    art_emb = jnp.swapaxes(
        jnp.take(params["enc_art_emb"], art_ids_p, axis=0), 1, 2)        # (Bp, D, Lp)
    ctx_enc = jnp.take(params["enc_ctx_emb"], ctx_ids_p, axis=0).reshape(Bp, WD)
    ctx_lm = jnp.take(params["lm_ctx_emb"], ctx_ids_p, axis=0).reshape(Bp, WD)

    vmem32 = 32 * 1024 * 1024

    # ---- stage A: encoder + LM trunk, gridded over batch tiles ----
    attn_p, h, enc = pl.pallas_call(
        functools.partial(_encoder_kernel, article_len=L),
        grid=(Bp // tile_ba,),
        in_specs=[
            pl.BlockSpec((tile_ba, D, Lp), lambda i: (i, 0, 0)),
            pl.BlockSpec((tile_ba, WD), lambda i: (i, 0)),
            pl.BlockSpec((tile_ba, WD), lambda i: (i, 0)),
            pl.BlockSpec((WD, D), lambda i: (0, 0)),
            pl.BlockSpec((1, D), lambda i: (0, 0)),
            pl.BlockSpec((WD, H), lambda i: (0, 0)),
            pl.BlockSpec((1, H), lambda i: (0, 0)),
        ],
        out_specs=(
            pl.BlockSpec((tile_ba, Lp), lambda i: (i, 0)),
            pl.BlockSpec((tile_ba, H), lambda i: (i, 0)),
            pl.BlockSpec((tile_ba, D), lambda i: (i, 0)),
        ),
        out_shape=(
            jax.ShapeDtypeStruct((Bp, Lp), jnp.float32),
            jax.ShapeDtypeStruct((Bp, H), jnp.bfloat16),
            jax.ShapeDtypeStruct((Bp, D), jnp.bfloat16),
        ),
        compiler_params=pltpu.CompilerParams(
            dimension_semantics=("parallel",),
            vmem_limit_bytes=vmem32),
    )(art_emb, ctx_enc, ctx_lm,
      params["enc_w"], params["enc_b"], params["lm_w"], params["lm_b"])

    wh, we, ob = prepped["out_wh"], prepped["out_we"], prepped["out_b"]
    n_row_tiles = Bp // tile_b
    n_vtiles = Vp // tile_v

    # ---- stage B pass 1: per-shard online logsumexp (no logits materialized) ----
    lse_part = pl.pallas_call(
        _lse_kernel,
        grid=(n_shards, n_row_tiles, tiles_per_shard),
        in_specs=[
            pl.BlockSpec((tile_b, H), lambda s, i, j: (i, 0)),
            pl.BlockSpec((tile_b, D), lambda s, i, j: (i, 0)),
            pl.BlockSpec((H, tile_v), lambda s, i, j: (0, s * tiles_per_shard + j)),
            pl.BlockSpec((D, tile_v), lambda s, i, j: (0, s * tiles_per_shard + j)),
            pl.BlockSpec((1, tile_v), lambda s, i, j: (0, s * tiles_per_shard + j)),
        ],
        out_specs=pl.BlockSpec((None, tile_b, 1), lambda s, i, j: (s, i, 0)),
        out_shape=jax.ShapeDtypeStruct((n_shards, Bp, 1), jnp.float32),
        scratch_shapes=[
            pltpu.VMEM((tile_b, 1), jnp.float32),   # running max
            pltpu.VMEM((tile_b, 1), jnp.float32),   # running sum
        ],
        compiler_params=pltpu.CompilerParams(
            dimension_semantics=("parallel", "parallel", "arbitrary"),
            vmem_limit_bytes=vmem32),
    )(h, enc, wh, we, ob)

    # merge the per-shard partial (m + log l) values: tiny (n_shards x Bp) log-add-exp
    m_all = jnp.max(lse_part, axis=0)                                    # (Bp, 1)
    lse = m_all + jnp.log(jnp.sum(jnp.exp(lse_part - m_all), axis=0))    # (Bp, 1)

    # ---- stage B pass 2: recompute logits, write logp directly ----
    logp_full = pl.pallas_call(
        _logp_kernel,
        grid=(n_row_tiles, n_vtiles),
        in_specs=[
            pl.BlockSpec((tile_b, H), lambda i, j: (i, 0)),
            pl.BlockSpec((tile_b, D), lambda i, j: (i, 0)),
            pl.BlockSpec((H, tile_v), lambda i, j: (0, j)),
            pl.BlockSpec((D, tile_v), lambda i, j: (0, j)),
            pl.BlockSpec((1, tile_v), lambda i, j: (0, j)),
            pl.BlockSpec((tile_b, 1), lambda i, j: (i, 0)),
        ],
        out_specs=pl.BlockSpec((tile_b, tile_v), lambda i, j: (i, j)),
        out_shape=jax.ShapeDtypeStruct((Bp, Vp), jnp.float32),
        compiler_params=pltpu.CompilerParams(
            dimension_semantics=("parallel", "parallel"),
            vmem_limit_bytes=vmem32),
    )(h, enc, wh, we, ob, lse)

    # NOTE: padding is kept minimal (Vp - V < tile_v, Bp - B < 64); for large B*V
    # consumers should slice lazily / keep the padded array to avoid this copy.
    logp = logp_full[:B, :V]
    attn = attn_p[:B, :L]
    return logp, attn


def build_forward(params, *, tile_v=4096, num_vocab_shards=2):
    """Precompute (once) the padded bf16 out_linear weights and return a jitted fwd."""
    H = params["lm_w"].shape[1]
    V = params["out_w"].shape[1]
    Vp, tile_v, n_shards, tiles_per_shard = _vocab_geometry(V, tile_v, num_vocab_shards)

    # hoisted out of the per-call forward (review item: no per-call convert/pad)
    out_w = params["out_w"]
    prepped = {
        # out_linear split into hidden / encoder halves -> no feat concat needed
        "out_wh": jnp.pad(out_w[:H].astype(jnp.bfloat16), ((0, 0), (0, Vp - V))),
        "out_we": jnp.pad(out_w[H:].astype(jnp.bfloat16), ((0, 0), (0, Vp - V))),
        # bias stays f32; padded vocab columns get -1e30 -> zero probability mass
        "out_b": jnp.pad(params["out_b"], ((0, 0), (0, Vp - V)),
                         constant_values=-1e30),
    }

    impl = functools.partial(_forward_impl, V=V, Vp=Vp, tile_v=tile_v,
                             n_shards=n_shards, tiles_per_shard=tiles_per_shard)
    jitted = jax.jit(impl)

    def forward(article_ids, title_ctx_ids):
        return jitted(article_ids, title_ctx_ids, params, prepped)

    return forward


# ------------------------------ params & reference ---------------------------

def init_params(key, *, vocab_size, bow_dim, window, hidden_size):
    ks = jax.random.split(key, 8)
    s = 0.05
    return {
        "enc_art_emb": s * jax.random.normal(ks[0], (vocab_size, bow_dim), jnp.float32),
        "enc_ctx_emb": s * jax.random.normal(ks[1], (vocab_size, bow_dim), jnp.float32),
        "lm_ctx_emb":  s * jax.random.normal(ks[2], (vocab_size, bow_dim), jnp.float32),
        "enc_w": s * jax.random.normal(ks[3], (bow_dim * window, bow_dim), jnp.float32),
        "enc_b": s * jax.random.normal(ks[4], (1, bow_dim), jnp.float32),
        "lm_w":  s * jax.random.normal(ks[5], (bow_dim * window, hidden_size), jnp.float32),
        "lm_b":  s * jax.random.normal(ks[6], (1, hidden_size), jnp.float32),
        # out_linear: (H + D) -> V, stored (in, out); rows [0:H]=hidden, [H:H+D]=encoder
        "out_w": s * jax.random.normal(ks[7], (hidden_size + bow_dim, vocab_size), jnp.float32),
        "out_b": jnp.zeros((1, vocab_size), jnp.float32),
    }


def reference_forward(article_ids, title_ctx_ids, params):
    B = article_ids.shape[0]
    art = params["enc_art_emb"][article_ids]                       # (B, L, D)
    ctx_e = params["enc_ctx_emb"][title_ctx_ids].reshape(B, -1)
    ctx_l = params["lm_ctx_emb"][title_ctx_ids].reshape(B, -1)
    q = ctx_e @ params["enc_w"] + params["enc_b"]
    scores = jnp.einsum('bld,bd->bl', art, q)
    attn = jax.nn.softmax(scores, axis=-1)
    enc = jnp.einsum('bl,bld->bd', attn, art)
    h = jnp.tanh(ctx_l @ params["lm_w"] + params["lm_b"])
    logits = jnp.concatenate([h, enc], 1) @ params["out_w"] + params["out_b"]
    return jax.nn.log_softmax(logits, axis=-1), attn


# ----------------------------------- main ------------------------------------

if __name__ == "__main__":
    B = 2       # batch
    L = 16      # article length
    W = 5       # opt.window
    D = 32      # opt.bowDim
    H = 32      # opt.hiddenSize
    V = 1000    # vocab size (padded to vocab tiles inside the wrapper)

    key = jax.random.PRNGKey(0)
    k_p, k_a, k_t = jax.random.split(key, 3)

    params = init_params(k_p, vocab_size=V, bow_dim=D, window=W, hidden_size=H)
    article = jax.random.randint(k_a, (B, L), 0, V, dtype=jnp.int32)
    title_ctx = jax.random.randint(k_t, (B, W), 0, V, dtype=jnp.int32)

    # small vocab tile so the demo exercises the multi-tile online logsumexp AND
    # the 2-way vocab-shard merge; production default is tile_v=4096 (all gens).
    fwd = build_forward(params, tile_v=256, num_vocab_shards=2)
    logp, attn = fwd(article, title_ctx)
    jax.block_until_ready((logp, attn))

    assert logp.shape == (B, V) and attn.shape == (B, L)
    # rows of exp(logp) and attn each sum to ~1
    assert jnp.allclose(jnp.sum(jnp.exp(logp), axis=-1), 1.0, atol=1e-3)
    assert jnp.allclose(jnp.sum(attn, axis=-1), 1.0, atol=1e-3)

    # compare against a pure-JAX reference (bf16 weight/feature stream -> loose logp tol)
    logp_ref, attn_ref = reference_forward(article, title_ctx, params)
    assert jnp.allclose(attn, attn_ref, atol=1e-3)
    assert jnp.allclose(logp, logp_ref, atol=3e-2)

    print("KERNEL_OK")
</pallas_src>

<mosaic_0001>
module attributes {stable_mosaic.version = 11 : i64} {
  func.func @_encoder_kernel(%arg0: i32, %arg1: memref<16x32x128xf32, #tpu.memory_space<vmem>>, %arg2: memref<16x160xf32, #tpu.memory_space<vmem>>, %arg3: memref<16x160xf32, #tpu.memory_space<vmem>>, %arg4: memref<160x32xf32, #tpu.memory_space<vmem>>, %arg5: memref<1x32xf32, #tpu.memory_space<vmem>>, %arg6: memref<160x32xf32, #tpu.memory_space<vmem>>, %arg7: memref<1x32xf32, #tpu.memory_space<vmem>>, %arg8: memref<16x128xf32, #tpu.memory_space<vmem>>, %arg9: memref<16x32xbf16, #tpu.memory_space<vmem>>, %arg10: memref<16x32xbf16, #tpu.memory_space<vmem>>) attributes {dimension_semantics = [#tpu.dimension_semantics<parallel>], iteration_bounds = array<i64: 1>, scalar_prefetch = 0 : i64, scratch_operands = 0 : i64, tpu.core_type = #tpu.core_type<tc>, window_params = [{transform_indices = @transform_0, window_bounds = array<i64: 16, 32, 128>}, {transform_indices = @transform_1, window_bounds = array<i64: 16, 160>}, {transform_indices = @transform_2, window_bounds = array<i64: 16, 160>}, {pipeline_mode = #tpu.pipeline_mode<synchronous>, transform_indices = @transform_3, window_bounds = array<i64: 160, 32>}, {pipeline_mode = #tpu.pipeline_mode<synchronous>, transform_indices = @transform_4, window_bounds = array<i64: 1, 32>}, {pipeline_mode = #tpu.pipeline_mode<synchronous>, transform_indices = @transform_5, window_bounds = array<i64: 160, 32>}, {pipeline_mode = #tpu.pipeline_mode<synchronous>, transform_indices = @transform_6, window_bounds = array<i64: 1, 32>}, {transform_indices = @transform_7, window_bounds = array<i64: 16, 128>}, {transform_indices = @transform_8, window_bounds = array<i64: 16, 32>}, {transform_indices = @transform_9, window_bounds = array<i64: 16, 32>}]} {
    %c0 = arith.constant 0 : index
    %c0_0 = arith.constant 0 : index
    %c0_1 = arith.constant 0 : index
    %0 = vector.load %arg1[%c0, %c0_0, %c0_1] : memref<16x32x128xf32, #tpu.memory_space<vmem>>, vector<16x32x128xf32>
    %c0_2 = arith.constant 0 : index
    %c0_3 = arith.constant 0 : index
    %1 = vector.load %arg2[%c0_2, %c0_3] : memref<16x160xf32, #tpu.memory_space<vmem>>, vector<16x160xf32>
    %c0_4 = arith.constant 0 : index
    %c0_5 = arith.constant 0 : index
    %2 = vector.load %arg4[%c0_4, %c0_5] : memref<160x32xf32, #tpu.memory_space<vmem>>, vector<160x32xf32>
    %cst = arith.constant dense<0.000000e+00> : vector<16x32xf32>
    %3 = tpu.matmul %1, %2, %cst {dimension_numbers = #tpu.dot_dimension_numbers<[1], [0], [0], [1], [0, 0, 1, 1], [], []>} : vector<16x160xf32>, vector<160x32xf32>, vector<16x32xf32> -> vector<16x32xf32>
    %c0_6 = arith.constant 0 : index
    %c0_7 = arith.constant 0 : index
    %4 = vector.load %arg5[%c0_6, %c0_7] : memref<1x32xf32, #tpu.memory_space<vmem>>, vector<1x32xf32>
    %5 = vector.broadcast %4 : vector<1x32xf32> to vector<16x32xf32>
    %6 = arith.addf %3, %5 : vector<16x32xf32>
    %7 = vector.shape_cast %6 : vector<16x32xf32> to vector<16x32x1xf32>
    %8 = vector.broadcast %7 : vector<16x32x1xf32> to vector<16x32x128xf32>
    %9 = arith.mulf %0, %8 : vector<16x32x128xf32>
    %cst_8 = arith.constant dense<0.000000e+00> : vector<16x128xf32>
    %10 = vector.multi_reduction <add>, %9, %cst_8 [1] : vector<16x32x128xf32> to vector<16x128xf32>
    %11 = tpu.iota {dimensions = array<i32: 1>} : vector<16x128xi32>
    %c16_i32 = arith.constant 16 : i32
    %12 = vector.broadcast %c16_i32 : i32 to vector<16x128xi32>
    %13 = arith.cmpi slt, %11, %12 : vector<16x128xi32>
    %cst_9 = arith.constant -1.000000e+30 : f32
    %14 = vector.broadcast %cst_9 : f32 to vector<16x128xf32>
    %15 = arith.select %13, %10, %14 : vector<16x128xi1>, vector<16x128xf32>
    %cst_10 = arith.constant dense<0xFF800000> : vector<16xf32>
    %16 = vector.multi_reduction <maximumf>, %15, %cst_10 [1] : vector<16x128xf32> to vector<16xf32>
    %17 = vector.shape_cast %16 : vector<16xf32> to vector<16x1xf32>
    %18 = vector.broadcast %17 : vector<16x1xf32> to vector<16x128xf32>
    %19 = arith.subf %15, %18 : vector<16x128xf32>
    %20 = math.exp %19 : vector<16x128xf32>
    %cst_11 = arith.constant dense<0.000000e+00> : vector<16xf32>
    %21 = vector.multi_reduction <add>, %20, %cst_11 [1] : vector<16x128xf32> to vector<16xf32>
    %22 = vector.shape_cast %21 : vector<16xf32> to vector<16x1xf32>
    %23 = tpu.reciprocal %22 {approx = true} : vector<16x1xf32> -> vector<16x1xf32>
    %24 = arith.mulf %22, %23 : vector<16x1xf32>
    %cst_12 = arith.constant 2.000000e+00 : f32
    %25 = vector.broadcast %cst_12 : f32 to vector<16x1xf32>
    %26 = arith.subf %25, %24 : vector<16x1xf32>
    %27 = arith.mulf %23, %26 : vector<16x1xf32>
    %28 = vector.broadcast %27 : vector<16x1xf32> to vector<16x128xf32>
    %29 = arith.mulf %20, %28 : vector<16x128xf32>
    %c0_13 = arith.constant 0 : index
    %c0_14 = arith.constant 0 : index
    %30 = vector.load %arg8[%c0_13, %c0_14] : memref<16x128xf32, #tpu.memory_space<vmem>>, vector<16x128xf32>
    tpu.vector_store %arg8[%c0_13, %c0_14], %29 {strides = array<i32>} : memref<16x128xf32, #tpu.memory_space<vmem>>, vector<16x128xf32>,
    %31 = vector.shape_cast %29 : vector<16x128xf32> to vector<16x1x128xf32>
    %32 = vector.broadcast %31 : vector<16x1x128xf32> to vector<16x32x128xf32>
    %33 = arith.mulf %0, %32 : vector<16x32x128xf32>
    %cst_15 = arith.constant dense<0.000000e+00> : vector<16x32xf32>
    %34 = vector.multi_reduction <add>, %33, %cst_15 [2] : vector<16x32x128xf32> to vector<16x32xf32>
    %35 = arith.truncf %34 : vector<16x32xf32> to vector<16x32xbf16>
    %c0_16 = arith.constant 0 : index
    %c0_17 = arith.constant 0 : index
    %36 = vector.load %arg10[%c0_16, %c0_17] : memref<16x32xbf16, #tpu.memory_space<vmem>>, vector<16x32xbf16>
    tpu.vector_store %arg10[%c0_16, %c0_17], %35 {strides = array<i32>} : memref<16x32xbf16, #tpu.memory_space<vmem>>, vector<16x32xbf16>,
    %c0_18 = arith.constant 0 : index
    %c0_19 = arith.constant 0 : index
    %37 = vector.load %arg3[%c0_18, %c0_19] : memref<16x160xf32, #tpu.memory_space<vmem>>, vector<16x160xf32>
    %c0_20 = arith.constant 0 : index
    %c0_21 = arith.constant 0 : index
    %38 = vector.load %arg6[%c0_20, %c0_21] : memref<160x32xf32, #tpu.memory_space<vmem>>, vector<160x32xf32>
    %cst_22 = arith.constant dense<0.000000e+00> : vector<16x32xf32>
    %39 = tpu.matmul %37, %38, %cst_22 {dimension_numbers = #tpu.dot_dimension_numbers<[1], [0], [0], [1], [0, 0, 1, 1], [], []>} : vector<16x160xf32>, vector<160x32xf32>, vector<16x32xf32> -> vector<16x32xf32>
    %c0_23 = arith.constant 0 : index
    %c0_24 = arith.constant 0 : index
    %40 = vector.load %arg7[%c0_23, %c0_24] : memref<1x32xf32, #tpu.memory_space<vmem>>, vector<1x32xf32>
    %41 = vector.broadcast %40 : vector<1x32xf32> to vector<16x32xf32>
    %42 = arith.addf %39, %41 : vector<16x32xf32>
    %43 = math.tanh %42 : vector<16x32xf32>
    %44 = arith.truncf %43 : vector<16x32xf32> to vector<16x32xbf16>
    %c0_25 = arith.constant 0 : index
    %c0_26 = arith.constant 0 : index
    %45 = vector.load %arg9[%c0_25, %c0_26] : memref<16x32xbf16, #tpu.memory_space<vmem>>, vector<16x32xbf16>
    tpu.vector_store %arg9[%c0_25, %c0_26], %44 {strides = array<i32>} : memref<16x32xbf16, #tpu.memory_space<vmem>>, vector<16x32xbf16>,
    return
  }
  func.func @transform_0(%arg0: i32) -> (i32, i32, i32) {
    %c0_i32 = arith.constant 0 : i32
    %c0_i32_0 = arith.constant 0 : i32
    %c0_i32_1 = arith.constant 0 : i32
    return %arg0, %c0_i32, %c0_i32_0 : i32, i32, i32
  }
  func.func @transform_1(%arg0: i32) -> (i32, i32) {
    %c0_i32 = arith.constant 0 : i32
    %c0_i32_0 = arith.constant 0 : i32
    return %arg0, %c0_i32 : i32, i32
  }
  func.func @transform_2(%arg0: i32) -> (i32, i32) {
    %c0_i32 = arith.constant 0 : i32
    %c0_i32_0 = arith.constant 0 : i32
    return %arg0, %c0_i32 : i32, i32
  }
  func.func @transform_3(%arg0: i32) -> (i32, i32) {
    %c0_i32 = arith.constant 0 : i32
    %c0_i32_0 = arith.constant 0 : i32
    %c0_i32_1 = arith.constant 0 : i32
    return %c0_i32, %c0_i32_0 : i32, i32
  }
  func.func @transform_4(%arg0: i32) -> (i32, i32) {
    %c0_i32 = arith.constant 0 : i32
    %c0_i32_0 = arith.constant 0 : i32
    %c0_i32_1 = arith.constant 0 : i32
    return %c0_i32, %c0_i32_0 : i32, i32
  }
  func.func @transform_5(%arg0: i32) -> (i32, i32) {
    %c0_i32 = arith.constant 0 : i32
    %c0_i32_0 = arith.constant 0 : i32
    %c0_i32_1 = arith.constant 0 : i32
    return %c0_i32, %c0_i32_0 : i32, i32
  }
  func.func @transform_6(%arg0: i32) -> (i32, i32) {
    %c0_i32 = arith.constant 0 : i32
    %c0_i32_0 = arith.constant 0 : i32
    %c0_i32_1 = arith.constant 0 : i32
    return %c0_i32, %c0_i32_0 : i32, i32
  }
  func.func @transform_7(%arg0: i32) -> (i32, i32) {
    %c0_i32 = arith.constant 0 : i32
    %c0_i32_0 = arith.constant 0 : i32
    return %arg0, %c0_i32 : i32, i32
  }
  func.func @transform_8(%arg0: i32) -> (i32, i32) {
    %c0_i32 = arith.constant 0 : i32
    %c0_i32_0 = arith.constant 0 : i32
    return %arg0, %c0_i32 : i32, i32
  }
  func.func @transform_9(%arg0: i32) -> (i32, i32) {
    %c0_i32 = arith.constant 0 : i32
    %c0_i32_0 = arith.constant 0 : i32
    return %arg0, %c0_i32 : i32, i32
  }
}

module attributes {stable_mosaic.version = 11 : i64} {
  func.func @_lse_kernel(%arg0: i32, %arg1: i32, %arg2: i32, %arg3: memref<16x32xbf16, #tpu.memory_space<vmem>>, %arg4: memref<16x32xbf16, #tpu.memory_space<vmem>>, %arg5: memref<32x256xbf16, #tpu.memory_space<vmem>>, %arg6: memref<32x256xbf16, #tpu.memory_space<vmem>>, %arg7: memref<1x256xf32, #tpu.memory_space<vmem>>, %arg8: memref<1x16x1xf32, #tpu.memory_space<vmem>>, %arg9: memref<16x1xf32, #tpu.memory_space<vmem>>, %arg10: memref<16x1xf32, #tpu.memory_space<vmem>>) attributes {dimension_semantics = [#tpu.dimension_semantics<parallel>, #tpu.dimension_semantics<parallel>, #tpu.dimension_semantics<arbitrary>], iteration_bounds = array<i64: 2, 1, 2>, scalar_prefetch = 0 : i64, scratch_operands = 2 : i64, tpu.core_type = #tpu.core_type<tc>, window_params = [{transform_indices = @transform_0, window_bounds = array<i64: 16, 32>}, {transform_indices = @transform_1, window_bounds = array<i64: 16, 32>}, {transform_indices = @transform_2, window_bounds = array<i64: 32, 256>}, {transform_indices = @transform_3, window_bounds = array<i64: 32, 256>}, {transform_indices = @transform_4, window_bounds = array<i64: 1, 256>}, {transform_indices = @transform_5, window_bounds = array<i64: 1, 16, 1>}]} {
    %c0_i32 = arith.constant 0 : i32
    %0 = arith.cmpi eq, %arg2, %c0_i32 : i32
    %1 = arith.extui %0 : i1 to i32
    %c0_i32_0 = arith.constant 0 : i32
    %2 = arith.cmpi ne, %1, %c0_i32_0 : i32
    scf.if %2 {
      %cst_22 = arith.constant 0xFF800000 : f32
      %32 = vector.broadcast %cst_22 : f32 to vector<16x1xf32>
      %c0_23 = arith.constant 0 : index
      %c0_24 = arith.constant 0 : index
      %33 = vector.load %arg9[%c0_23, %c0_24] : memref<16x1xf32, #tpu.memory_space<vmem>>, vector<16x1xf32>
      tpu.vector_store %arg9[%c0_23, %c0_24], %32 {strides = array<i32>} : memref<16x1xf32, #tpu.memory_space<vmem>>, vector<16x1xf32>,
      %cst_25 = arith.constant 0.000000e+00 : f32
      %34 = vector.broadcast %cst_25 : f32 to vector<16x1xf32>
      %c0_26 = arith.constant 0 : index
      %c0_27 = arith.constant 0 : index
      %35 = vector.load %arg10[%c0_26, %c0_27] : memref<16x1xf32, #tpu.memory_space<vmem>>, vector<16x1xf32>
      tpu.vector_store %arg10[%c0_26, %c0_27], %34 {strides = array<i32>} : memref<16x1xf32, #tpu.memory_space<vmem>>, vector<16x1xf32>,
    } else {
    }
    %c0 = arith.constant 0 : index
    %c0_1 = arith.constant 0 : index
    %3 = vector.load %arg3[%c0, %c0_1] : memref<16x32xbf16, #tpu.memory_space<vmem>>, vector<16x32xbf16>
    %c0_2 = arith.constant 0 : index
    %c0_3 = arith.constant 0 : index
    %4 = vector.load %arg5[%c0_2, %c0_3] : memref<32x256xbf16, #tpu.memory_space<vmem>>, vector<32x256xbf16>
    %cst = arith.constant dense<0.000000e+00> : vector<16x256xf32>
    %5 = tpu.matmul %3, %4, %cst {dimension_numbers = #tpu.dot_dimension_numbers<[1], [0], [0], [1], [0, 0, 1, 1], [], []>} : vector<16x32xbf16>, vector<32x256xbf16>, vector<16x256xf32> -> vector<16x256xf32>
    %c0_4 = arith.constant 0 : index
    %c0_5 = arith.constant 0 : index
    %6 = vector.load %arg4[%c0_4, %c0_5] : memref<16x32xbf16, #tpu.memory_space<vmem>>, vector<16x32xbf16>
    %c0_6 = arith.constant 0 : index
    %c0_7 = arith.constant 0 : index
    %7 = vector.load %arg6[%c0_6, %c0_7] : memref<32x256xbf16, #tpu.memory_space<vmem>>, vector<32x256xbf16>
    %cst_8 = arith.constant dense<0.000000e+00> : vector<16x256xf32>
    %8 = tpu.matmul %6, %7, %cst_8 {dimension_numbers = #tpu.dot_dimension_numbers<[1], [0], [0], [1], [0, 0, 1, 1], [], []>} : vector<16x32xbf16>, vector<32x256xbf16>, vector<16x256xf32> -> vector<16x256xf32>
    %9 = arith.addf %5, %8 : vector<16x256xf32>
    %c0_9 = arith.constant 0 : index
    %c0_10 = arith.constant 0 : index
    %10 = vector.load %arg7[%c0_9, %c0_10] : memref<1x256xf32, #tpu.memory_space<vmem>>, vector<1x256xf32>
    %11 = vector.broadcast %10 : vector<1x256xf32> to vector<16x256xf32>
    %12 = arith.addf %9, %11 : vector<16x256xf32>
    %c0_11 = arith.constant 0 : index
    %c0_12 = arith.constant 0 : index
    %13 = vector.load %arg9[%c0_11, %c0_12] : memref<16x1xf32, #tpu.memory_space<vmem>>, vector<16x1xf32>
    %cst_13 = arith.constant dense<0xFF800000> : vector<16xf32>
    %14 = vector.multi_reduction <maximumf>, %12, %cst_13 [1] : vector<16x256xf32> to vector<16xf32>
    %15 = vector.shape_cast %14 : vector<16xf32> to vector<16x1xf32>
    %16 = arith.maximumf %13, %15 : vector<16x1xf32>
    %c0_14 = arith.constant 0 : index
    %c0_15 = arith.constant 0 : index
    %17 = vector.load %arg10[%c0_14, %c0_15] : memref<16x1xf32, #tpu.memory_space<vmem>>, vector<16x1xf32>
    %18 = arith.subf %13, %16 : vector<16x1xf32>
    %19 = math.exp %18 : vector<16x1xf32>
    %20 = arith.mulf %17, %19 : vector<16x1xf32>
    %21 = vector.broadcast %16 : vector<16x1xf32> to vector<16x256xf32>
    %22 = arith.subf %12, %21 : vector<16x256xf32>
    %23 = math.exp %22 : vector<16x256xf32>
    %cst_16 = arith.constant dense<0.000000e+00> : vector<16xf32>
    %24 = vector.multi_reduction <add>, %23, %cst_16 [1] : vector<16x256xf32> to vector<16xf32>
    %25 = vector.shape_cast %24 : vector<16xf32> to vector<16x1xf32>
    %26 = arith.addf %20, %25 : vector<16x1xf32>
    %c0_17 = arith.constant 0 : index
    %c0_18 = arith.constant 0 : index
    %27 = vector.load %arg10[%c0_17, %c0_18] : memref<16x1xf32, #tpu.memory_space<vmem>>, vector<16x1xf32>
    tpu.vector_store %arg10[%c0_17, %c0_18], %26 {strides = array<i32>} : memref<16x1xf32, #tpu.memory_space<vmem>>, vector<16x1xf32>,
    %c0_19 = arith.constant 0 : index
    %c0_20 = arith.constant 0 : index
    %28 = vector.load %arg9[%c0_19, %c0_20] : memref<16x1xf32, #tpu.memory_space<vmem>>, vector<16x1xf32>
    tpu.vector_store %arg9[%c0_19, %c0_20], %16 {strides = array<i32>} : memref<16x1xf32, #tpu.memory_space<vmem>>, vector<16x1xf32>,
    %c1_i32 = arith.constant 1 : i32
    %29 = arith.cmpi eq, %arg2, %c1_i32 : i32
    %30 = arith.extui %29 : i1 to i32
    %c0_i32_21 = arith.constant 0 : i32
    %31 = arith.cmpi ne, %30, %c0_i32_21 : i32
    scf.if %31 {
      %c0_22 = arith.constant 0 : index
      %c0_23 = arith.constant 0 : index
      %32 = vector.load %arg9[%c0_22, %c0_23] : memref<16x1xf32, #tpu.memory_space<vmem>>, vector<16x1xf32>
      %c0_24 = arith.constant 0 : index
      %c0_25 = arith.constant 0 : index
      %33 = vector.load %arg10[%c0_24, %c0_25] : memref<16x1xf32, #tpu.memory_space<vmem>>, vector<16x1xf32>
      %34 = math.log %33 : vector<16x1xf32>
      %35 = arith.addf %32, %34 : vector<16x1xf32>
      %c0_26 = arith.constant 0 : index
      %c0_27 = arith.constant 0 : index
      %c0_28 = arith.constant 0 : index
      %36 = vector.load %arg8[%c0_26, %c0_27, %c0_28] : memref<1x16x1xf32, #tpu.memory_space<vmem>>, vector<1x16x1xf32>
      %37 = vector.shape_cast %36 : vector<1x16x1xf32> to vector<16x1xf32>
      %38 = vector.shape_cast %35 : vector<16x1xf32> to vector<1x16x1xf32>
      tpu.vector_store %arg8[%c0_26, %c0_27, %c0_28], %38 {strides = array<i32>} : memref<1x16x1xf32, #tpu.memory_space<vmem>>, vector<1x16x1xf32>,
    } else {
    }
    return
  }
  func.func @transform_0(%arg0: i32, %arg1: i32, %arg2: i32) -> (i32, i32) {
    %c0_i32 = arith.constant 0 : i32
    %c0_i32_0 = arith.constant 0 : i32
    return %arg1, %c0_i32 : i32, i32
  }
  func.func @transform_1(%arg0: i32, %arg1: i32, %arg2: i32) -> (i32, i32) {
    %c0_i32 = arith.constant 0 : i32
    %c0_i32_0 = arith.constant 0 : i32
    return %arg1, %c0_i32 : i32, i32
  }
  func.func @transform_2(%arg0: i32, %arg1: i32, %arg2: i32) -> (i32, i32) {
    %c2_i32 = arith.constant 2 : i32
    %0 = arith.muli %arg0, %c2_i32 : i32
    %1 = arith.addi %0, %arg2 : i32
    %c0_i32 = arith.constant 0 : i32
    %c0_i32_0 = arith.constant 0 : i32
    return %c0_i32, %1 : i32, i32
  }
  func.func @transform_3(%arg0: i32, %arg1: i32, %arg2: i32) -> (i32, i32) {
    %c2_i32 = arith.constant 2 : i32
    %0 = arith.muli %arg0, %c2_i32 : i32
    %1 = arith.addi %0, %arg2 : i32
    %c0_i32 = arith.constant 0 : i32
    %c0_i32_0 = arith.constant 0 : i32
    return %c0_i32, %1 : i32, i32
  }
  func.func @transform_4(%arg0: i32, %arg1: i32, %arg2: i32) -> (i32, i32) {
    %c2_i32 = arith.constant 2 : i32
    %0 = arith.muli %arg0, %c2_i32 : i32
    %1 = arith.addi %0, %arg2 : i32
    %c0_i32 = arith.constant 0 : i32
    %c0_i32_0 = arith.constant 0 : i32
    return %c0_i32, %1 : i32, i32
  }
  func.func @transform_5(%arg0: i32, %arg1: i32, %arg2: i32) -> (i32, i32, i32) {
    %c0_i32 = arith.constant 0 : i32
    %c0_i32_0 = arith.constant 0 : i32
    return %arg0, %arg1, %c0_i32 : i32, i32, i32
  }
}

module attributes {stable_mosaic.version = 11 : i64} {
  func.func @_logp_kernel(%arg0: i32, %arg1: i32, %arg2: memref<16x32xbf16, #tpu.memory_space<vmem>>, %arg3: memref<16x32xbf16, #tpu.memory_space<vmem>>, %arg4: memref<32x256xbf16, #tpu.memory_space<vmem>>, %arg5: memref<32x256xbf16, #tpu.memory_space<vmem>>, %arg6: memref<1x256xf32, #tpu.memory_space<vmem>>, %arg7: memref<16x1xf32, #tpu.memory_space<vmem>>, %arg8: memref<16x256xf32, #tpu.memory_space<vmem>>) attributes {dimension_semantics = [#tpu.dimension_semantics<parallel>, #tpu.dimension_semantics<parallel>], iteration_bounds = array<i64: 1, 4>, scalar_prefetch = 0 : i64, scratch_operands = 0 : i64, tpu.core_type = #tpu.core_type<tc>, window_params = [{transform_indices = @transform_0, window_bounds = array<i64: 16, 32>}, {transform_indices = @transform_1, window_bounds = array<i64: 16, 32>}, {transform_indices = @transform_2, window_bounds = array<i64: 32, 256>}, {transform_indices = @transform_3, window_bounds = array<i64: 32, 256>}, {transform_indices = @transform_4, window_bounds = array<i64: 1, 256>}, {transform_indices = @transform_5, window_bounds = array<i64: 16, 1>}, {transform_indices = @transform_6, window_bounds = array<i64: 16, 256>}]} {
    %c0 = arith.constant 0 : index
    %c0_0 = arith.constant 0 : index
    %0 = vector.load %arg2[%c0, %c0_0] : memref<16x32xbf16, #tpu.memory_space<vmem>>, vector<16x32xbf16>
    %c0_1 = arith.constant 0 : index
    %c0_2 = arith.constant 0 : index
    %1 = vector.load %arg4[%c0_1, %c0_2] : memref<32x256xbf16, #tpu.memory_space<vmem>>, vector<32x256xbf16>
    %cst = arith.constant dense<0.000000e+00> : vector<16x256xf32>
    %2 = tpu.matmul %0, %1, %cst {dimension_numbers = #tpu.dot_dimension_numbers<[1], [0], [0], [1], [0, 0, 1, 1], [], []>} : vector<16x32xbf16>, vector<32x256xbf16>, vector<16x256xf32> -> vector<16x256xf32>
    %c0_3 = arith.constant 0 : index
    %c0_4 = arith.constant 0 : index
    %3 = vector.load %arg3[%c0_3, %c0_4] : memref<16x32xbf16, #tpu.memory_space<vmem>>, vector<16x32xbf16>
    %c0_5 = arith.constant 0 : index
    %c0_6 = arith.constant 0 : index
    %4 = vector.load %arg5[%c0_5, %c0_6] : memref<32x256xbf16, #tpu.memory_space<vmem>>, vector<32x256xbf16>
    %cst_7 = arith.constant dense<0.000000e+00> : vector<16x256xf32>
    %5 = tpu.matmul %3, %4, %cst_7 {dimension_numbers = #tpu.dot_dimension_numbers<[1], [0], [0], [1], [0, 0, 1, 1], [], []>} : vector<16x32xbf16>, vector<32x256xbf16>, vector<16x256xf32> -> vector<16x256xf32>
    %6 = arith.addf %2, %5 : vector<16x256xf32>
    %c0_8 = arith.constant 0 : index
    %c0_9 = arith.constant 0 : index
    %7 = vector.load %arg6[%c0_8, %c0_9] : memref<1x256xf32, #tpu.memory_space<vmem>>, vector<1x256xf32>
    %8 = vector.broadcast %7 : vector<1x256xf32> to vector<16x256xf32>
    %9 = arith.addf %6, %8 : vector<16x256xf32>
    %c0_10 = arith.constant 0 : index
    %c0_11 = arith.constant 0 : index
    %10 = vector.load %arg7[%c0_10, %c0_11] : memref<16x1xf32, #tpu.memory_space<vmem>>, vector<16x1xf32>
    %11 = vector.broadcast %10 : vector<16x1xf32> to vector<16x256xf32>
    %12 = arith.subf %9, %11 : vector<16x256xf32>
    %c0_12 = arith.constant 0 : index
    %c0_13 = arith.constant 0 : index
    %13 = vector.load %arg8[%c0_12, %c0_13] : memref<16x256xf32, #tpu.memory_space<vmem>>, vector<16x256xf32>
    tpu.vector_store %arg8[%c0_12, %c0_13], %12 {strides = array<i32>} : memref<16x256xf32, #tpu.memory_space<vmem>>, vector<16x256xf32>,
    return
  }
  func.func @transform_0(%arg0: i32, %arg1: i32) -> (i32, i32) {
    %c0_i32 = arith.constant 0 : i32
    %c0_i32_0 = arith.constant 0 : i32
    return %arg0, %c0_i32 : i32, i32
  }
  func.func @transform_1(%arg0: i32, %arg1: i32) -> (i32, i32) {
    %c0_i32 = arith.constant 0 : i32
    %c0_i32_0 = arith.constant 0 : i32
    return %arg0, %c0_i32 : i32, i32
  }
  func.func @transform_2(%arg0: i32, %arg1: i32) -> (i32, i32) {
    %c0_i32 = arith.constant 0 : i32
    %c0_i32_0 = arith.constant 0 : i32
    return %c0_i32, %arg1 : i32, i32
  }
  func.func @transform_3(%arg0: i32, %arg1: i32) -> (i32, i32) {
    %c0_i32 = arith.constant 0 : i32
    %c0_i32_0 = arith.constant 0 : i32
    return %c0_i32, %arg1 : i32, i32
  }
  func.func @transform_4(%arg0: i32, %arg1: i32) -> (i32, i32) {
    %c0_i32 = arith.constant 0 : i32
    %c0_i32_0 = arith.constant 0 : i32
    return %c0_i32, %arg1 : i32, i32
  }
  func.func @transform_5(%arg0: i32, %arg1: i32) -> (i32, i32) {
    %c0_i32 = arith.constant 0 : i32
    %c0_i32_0 = arith.constant 0 : i32
    return %arg0, %c0_i32 : i32, i32
  }
  func.func @transform_6(%arg0: i32, %arg1: i32) -> (i32, i32) {
    %c0_i32 = arith.constant 0 : i32
    return %arg0, %arg1 : i32, i32
  }
}

</mosaic_0001>

<bundles_post_ra>
// kernel: _forward_impl.5
= control target key start
LH: loop header
LB: loop body
LE: loop exit
PB: predicated region body
PF: predicated region fallthrough
CT: control target
= control target key end

     0   :  { %s1003_s21 = smov 0   ;;  %s1005_s22 = smov 0   ;;  %s1109_s0 = inlined_call_operand.vmem [shape: bf16[16,32], index: 0, kind: input, shape index: {}]   ;;  %s1110_s1 = inlined_call_operand.vmem [shape: bf16[16,32], index: 1, kind: input, shape index: {}]   ;;  %s1111_s2 = inlined_call_operand.vmem [shape: bf16[32,1024], index: 2, kind: input, shape index: {}]   ;;  %s1112_s3 = inlined_call_operand.vmem [shape: bf16[32,1024], index: 3, kind: input, shape index: {}]   ;;  %s1113_s4 = inlined_call_operand.vmem [shape: f32[1,1024], index: 4, kind: input, shape index: {}]   ;;  %s1114_s5 = inlined_call_operand.vmem [shape: f32[16,1], index: 5, kind: input, shape index: {}]   ;;  %s1115_s6 = inlined_call_operand.vmem [shape: f32[16,1024], index: 6, kind: output, shape index: {}]  }
   0x1   :  { %s1007_s23 = smov 0   ;;  %s1009_s24 = smov 0  }
   0x2   :  { %s1011_s25 = smov 0  }
   0x3 LB: > { %s25_s26 = sadd.s32 1, %s961_s24  ;;  %s833_s27 = sadd.s32 4294967295, %s965_s25   ;;  %s965_s25 = sphi %s1011_s25, %s16_s25   ;;  %s961_s24 = sphi %s1009_s24, %s1121_s24   ;;  %s957_s23 = sphi %s1007_s23, %s1120_s23   ;;  %s953_s22 = sphi %s1005_s22, %s1119_s22   ;;  %s949_s21 = sphi %s1003_s21, %s1118_s21  }
   0x4   : > { %p26_p0 = scmp.ge.s32.totalorder %s25_s26, 4  ;;  %p94_p1 = scmp.ne.s32.totalorder %s953_s22, %s949_s21 }
   0x5   : > { %p95_p2 = scmp.eq.s32.totalorder %s965_s25, 0  ;;  %p204_p4 = scmp.eq.s32.totalorder %s833_s27, 3 }
   0x6   : > { %s1123_s26 = smov (%p26_p0, %s25_s26), 0  ;;  %s87_s30 = sadd.s32 1, %s953_s22 }
   0x7   : > { %p1035_p3 = por %p95_p2, %p94_p1  ;;  %s84_s29 = ssub.s32 %s961_s24, %s1123_s26 }
   0x8   : > { %p85_p5 = scmp.eq.s32.totalorder %s84_s29, 0  ;;  %p1042_p6 = por %p204_p4, %p94_p1 }
   0x9   : > { %p839_p7 = scmp.ge.s32.totalorder %s965_s25, 4 }
   0xa   : > { %s1047_s8 = scalar_select %p85_p5, %s953_s22, %s87_s30  }
   0xb   : > { %253 = sbr.rel (%p839_p7) target bundleno = 32 (0x20), region = 28 }
  0x10   : > { %256 = sbr.rel (!%p1035_p3) target bundleno = 24 (0x18), region = 32  ;;  %s258_s9 = sand.u32 (%p1035_p3), 1, %s953_s22  }
  0x11   : > { %s868_s10 = sshll.u32 (%p1035_p3), %s961_s24, 3  ;;  %s840_s11 = sshll.u32 (%p1035_p3), %s258_s9, 5 }
  0x12   : > { %s263_s14 = scalar_lea.vmem (%p1035_p3), %s1111_s2, %s868_s10  ;;  %s260_s15 = scalar_lea.vmem (%p1035_p3), [#allocation2], %s840_s11 }
  0x13   : > { %v298_v0 = vld [vmem:[%s263_s14] sm:$0xff] (%p1035_p3) }
  0x14   : > { %v300_v1 = vld [vmem:[%s263_s14 + $0x20] sm:$0xff] (%p1035_p3)  ;;  %299 = vst [vmem:[%s260_s15] sm:$0xff] (%p1035_p3), %v298_v0 }
  0x15   : > { %v302_v2 = vld [vmem:[%s263_s14 + $0x40] sm:$0xff]  ;;  %301 = vst [vmem:[%s260_s15 + $0x8] sm:$0xff] %v300_v1 }
  0x16   : > { %303 = vst [vmem:[%s260_s15 + $0x10] sm:$0xff] %v302_v2  ;;  %v304_v3 = vld [vmem:[%s263_s14 + $0x60] sm:$0xff] }
  0x17   : > { %305 = vst [vmem:[%s260_s15 + $0x18] sm:$0xff] %v304_v3 }
  0x18 PF: > { %311 = sbr.rel (!%p1035_p3) target bundleno = 32 (0x20), region = 70  ;;  %s313_s16 = sand.u32 (%p1035_p3), 1, %s953_s22  }
  0x19   : > { %s869_s17 = sshll.u32 (%p1035_p3), %s961_s24, 3  ;;  %s843_s18 = sshll.u32 (%p1035_p3), %s313_s16, 5 }
  0x1a   : > { %s318_s27 = scalar_lea.vmem (%p1035_p3), %s1112_s3, %s869_s17  ;;  %s315_s29 = scalar_lea.vmem (%p1035_p3), [#allocation3], %s843_s18 }
  0x1b   : > { %v353_v4 = vld [vmem:[%s318_s27] sm:$0xff] (%p1035_p3) }
  0x1c   : > { %v355_v5 = vld [vmem:[%s318_s27 + $0x20] sm:$0xff] (%p1035_p3)  ;;  %354 = vst [vmem:[%s315_s29] sm:$0xff] (%p1035_p3), %v353_v4 }
  0x1d   : > { %v357_v6 = vld [vmem:[%s318_s27 + $0x40] sm:$0xff]  ;;  %356 = vst [vmem:[%s315_s29 + $0x8] sm:$0xff] %v355_v5 }
  0x1e   : > { %358 = vst [vmem:[%s315_s29 + $0x10] sm:$0xff] %v357_v6  ;;  %v359_v7 = vld [vmem:[%s318_s27 + $0x60] sm:$0xff] }
  0x1f   : > { %360 = vst [vmem:[%s315_s29 + $0x18] sm:$0xff] %v359_v7 }
  0x20 PF: > { %p846_p8 = scmp.ge.s32.totalorder %s965_s25, 1  ;;  %p373_p9 = scmp.lt.s32.totalorder %s965_s25, 5 }
  0x22   : > { %p374_p10 = pnand %p846_p8, %p373_p9 }
  0x23   : > { %s380_s28 = sand.u32 (!%p374_p10), 1, %s949_s21   ;;  %s850_s18 = sshll.u32 (!%p374_p10), %s957_s23, 1 }
  0x24   : > { %377 = sbr.rel (%p374_p10) target bundleno = 266 (0x10a), region = 112  ;;  %s1067_s30 = sshll.u32 (!%p374_p10), %s380_s28, 5 }
  0x25   : > { %s389_s11 = scalar_lea.vmem (!%p374_p10), [#allocation3], %s1067_s30  ;;  %s382_s21 = scalar_lea.vmem (!%p374_p10), [#allocation2], %s1067_s30 }
  0x26   : > { %p453_p11 = scmp.lt.s32.totalorder (!%p374_p10), %s850_s18, 7  ;;  %s437_s29 = scalar_lea.vmem (!%p374_p10), [#allocation4], %s1067_s30 }
  0x29   : > { %v967_v8 = vmov 0   ;;  %v637_v9 = vld [vmem:[%s1114_s5] sm:$0xff]  ;;  %v913_v10 = vld [vmem:[%s389_s11 + $0x14] ss:$8 sps:$4 sm:$0xff]   ;;  %v638_v11 = vld [vmem:[%s1114_s5 + $0x8] sm:$0xff]  ;;  %vm503_vm0 = vcmask 261120   ;;  %v623_v21 = vlaneseq }
  0x2a   : > { %539 = vmatprep.mubr.bf16.mxu0 %v967_v8  ;;  %610 = vmatprep.mubr.bf16.mxu1 %v967_v8  ;;  %v915_v12 = vld [vmem:[%s382_s21 + $0x14] ss:$8 sps:$4 sm:$0xff]   ;;  %v917_v13 = vld [vmem:[%s389_s11 + $0x10] ss:$8 sps:$4 sm:$0xff]   ;;  %v919_v15 = vld [vmem:[%s389_s11 + $0x4] ss:$8 sps:$4 sm:$0xff]  }
  0x2b   : > { %912 = vset.pattern.permute.xlu0 %v967_v8  ;;  %519 = vmatprep.subr.bf16.mxu0 %v913_v10  ;;  %v918_v14 = vld [vmem:[%s382_s21 + $0x10] ss:$8 sps:$4 sm:$0xff]   ;;  %v921_v16 = vld [vmem:[%s382_s21 + $0x4] ss:$8 sps:$4 sm:$0xff]   ;;  %v923_v17 = vld [vmem:[%s389_s11] ss:$8 sps:$4 sm:$0xff]  }
  0x2c   : > { %641 = vperm.xlu0 %912, %v637_v9   ;;  %590 = vmatprep.subr.bf16.mxu1 %v915_v12  ;;  %v924_v18 = vld [vmem:[%s382_s21] ss:$8 sps:$4 sm:$0xff]   ;;  %s1125_s18 = smov (!%p453_p11, %s850_s18), 7  ;;  %v624_v22 = vshrl.u32 %v623_v21, 7  ;;  %s870_s28 = sshll.u32 (%p1042_p6), %s957_s23, 4 }
  0x2d   : > { %520 = vmatpush1.bf16.msra.mxu0 %v917_v13  ;;  %591 = vmatpush1.bf16.msra.mxu1 %v918_v14  ;;  %v925_v19 = vld [vmem:[%s1110_s1] sm:$0xff]   ;;  %s455_s27 = scalar_lea.vmem %s1113_s4, %s1125_s18  ;;  %s669_s10 = scalar_lea.vmem (%p1042_p6), %s1115_s6, %s870_s28 }
  0x2e   : > { %521 = vmatprep.subr.bf16.mxu0 %v919_v15  ;;  %592 = vmatprep.subr.bf16.mxu1 %v921_v16  ;;  %v926_v20 = vld [vmem:[%s1109_s0] sm:$0xff]   ;;  %v625_v23 = vsub.s32 0, %v624_v22  ;;  %v629_v25 = vsub.s32 1, %v624_v22 }
  0x2f   : > { %v621_v24 = vld [vmem:[%s455_s27] sm:$0x3] }
  0x30   : > { %646 = vperm.xlu0 %912, %v638_v11   ;;  %v626_v26 = vrot.slane %v621_v24, %v625_v23  ;;  %v630_v31 = vrot.slane %v621_v24, %v629_v25 }
  0x31   : > { %522 = vmatpush1.bf16.msra.mxu0 %v923_v17  ;;  %593 = vmatpush1.bf16.msra.mxu1 %v924_v18 }
  0x34   : > { %856 = vmatmul.mubr.msk.bf16.vlgmr.msra.gmra.mxu0 %vm503_vm0, %v925_v19  ;;  %862 = vmatmul.mubr.msk.bf16.vlgmr.msra.gmra.mxu1 %vm503_vm0, %v926_v20 }
  0xa7   : > { %v642_v30 = vpop.permute.xlu0 %641 }
  0xab   : > { %v647_v46 = vpop.permute.xlu0 %646 }
  0xf4   : > { %v541_v27 = vpop.f32.mrf.mxu0  ;;  %v612_v28 = vpop.f32.mrf.mxu1 }
  0xf5   : > { %v613_v29 = vadd.f32 %v612_v28, %v541_v27 }
  0xf6   : > { %v543_v32 = vpop.f32.mrf.mxu0  ;;  %v614_v33 = vpop.f32.mrf.mxu1 }
  0xf7   : > { %v633_v34 = vadd.f32 %v626_v26, %v613_v29  ;;  %v615_v35 = vadd.f32 %v614_v33, %v543_v32 }
  0xf8   : > { %v545_v36 = vpop.f32.mrf.mxu0  ;;  %v616_v37 = vpop.f32.mrf.mxu1 }
  0xf9   : > { %v649_v38 = vsub.f32 %v633_v34, %v642_v30  ;;  %v634_v39 = vadd.f32 %v630_v31, %v615_v35  ;;  %v617_v40 = vadd.f32 %v616_v37, %v545_v36 }
  0xfa   : > { %v547_v41 = vpop.f32.mrf.mxu0  ;;  %v618_v42 = vpop.f32.mrf.mxu1 }
  0xfb   : > { %653 = vst [vmem:[%s437_s29] sm:$0xff] %v649_v38  ;;  %v650_v43 = vsub.f32 %v634_v39, %v642_v30  ;;  %v635_v44 = vadd.f32 %v626_v26, %v617_v40  ;;  %v619_v45 = vadd.f32 %v618_v42, %v547_v41 }
  0xfd   : > { %654 = vst [vmem:[%s437_s29 + $0x8] sm:$0xff] %v650_v43  ;;  %v651_v47 = vsub.f32 %v635_v44, %v647_v46  ;;  %v636_v48 = vadd.f32 %v630_v31, %v619_v45  ;;  %663 = sbr.rel (!%p1042_p6) target bundleno = 266 (0x10a), region = 124 }
  0xff   : > { %655 = vst [vmem:[%s437_s29 + $0x10] sm:$0xff] %v651_v47  ;;  %v652_v49 = vsub.f32 %v636_v48, %v647_v46 }
 0x101   : > { %656 = vst [vmem:[%s437_s29 + $0x18] sm:$0xff] %v652_v49 }
 0x102   : > { %v682_v50 = vld [vmem:[%s437_s29] sm:$0xff] }
 0x103   : > { %683 = vst [vmem:[%s669_s10] sm:$0xff] %v682_v50 }
 0x104   : > { %v684_v51 = vld [vmem:[%s437_s29 + $0x8] sm:$0xff] }
 0x105   : > { %685 = vst [vmem:[%s669_s10 + $0x8] sm:$0xff] %v684_v51 }
 0x106   : > { %v686_v52 = vld [vmem:[%s437_s29 + $0x10] sm:$0xff] }
 0x107   : > { %687 = vst [vmem:[%s669_s10 + $0x40] sm:$0xff] %v686_v52 }
 0x108   : > { %v688_v53 = vld [vmem:[%s437_s29 + $0x18] sm:$0xff] }
 0x109   : > { %689 = vst [vmem:[%s669_s10 + $0x48] sm:$0xff] %v688_v53 }
 0x10a PF: > { %s16_s25 = sadd.s32 1, %s965_s25   ;;  %s1118_s21 = smov %s953_s22 }
 0x10b   : > { %p13_p12 = scmp.ge.s32.totalorder %s16_s25, 6   ;;  %s1119_s22 = smov %s1047_s8 }
 0x10c   : > { %s1120_s23 = smov %s961_s24  ;;  %s1121_s24 = smov %s1123_s26 }
 0x10d   :  { %15 = sbr.rel (!%p13_p12) target bundleno = 3 (0x3), region = 198 }

// kernel: _forward_impl.4
= control target key start
LH: loop header
LB: loop body
LE: loop exit
PB: predicated region body
PF: predicated region fallthrough
CT: control target
= control target key end

     0   :  { %s1098_s18 = smov 0   ;;  %s1100_s19 = smov 0   ;;  %s1233_s0 = inlined_call_operand.vmem [shape: bf16[16,32], index: 0, kind: input, shape index: {}]   ;;  %s1234_s1 = inlined_call_operand.vmem [shape: bf16[16,32], index: 1, kind: input, shape index: {}]   ;;  %s1235_s2 = inlined_call_operand.vmem [shape: bf16[32,1024], index: 2, kind: input, shape index: {}]   ;;  %s1236_s3 = inlined_call_operand.vmem [shape: bf16[32,1024], index: 3, kind: input, shape index: {}]   ;;  %s1237_s4 = inlined_call_operand.vmem [shape: f32[1,1024], index: 4, kind: input, shape index: {}]   ;;  %s1238_s5 = inlined_call_operand.vmem [shape: f32[2,16,1], index: 5, kind: output, shape index: {}]  }
   0x1   :  { %s1102_s20 = smov 0   ;;  %s1104_s21 = smov 0  }
   0x2   :  { %s1106_s22 = smov 0   ;;  %s1108_s23 = smov 0  }
   0x3   :  { %s1110_s24 = smov 0  }
   0x4 LB: > { %s27_s25 = sadd.s32 1, %s1055_s22  ;;  %s34_s26 = sadd.s32 1, %s1059_s23  ;;  %s1063_s24 = sphi %s1110_s24, %s15_s24   ;;  %s1059_s23 = sphi %s1108_s23, %s1245_s23   ;;  %s1055_s22 = sphi %s1106_s22, %s1244_s22   ;;  %s1051_s21 = sphi %s1104_s21, %s1243_s21   ;;  %s1047_s20 = sphi %s1102_s20, %s1242_s20   ;;  %s1043_s19 = sphi %s1100_s19, %s1241_s19   ;;  %s1039_s18 = sphi %s1098_s18, %s1240_s18  }
   0x5   : > { %p28_p0 = scmp.ge.s32.totalorder %s27_s25, 2  ;;  %p104_p1 = scmp.ne.s32.totalorder %s1043_s19, %s1039_s18 }
   0x6   : > { %p105_p2 = scmp.eq.s32.totalorder %s1063_s24, 0  ;;  %s874_s27 = sshll.u32 %s1059_s23, 1 }
   0x7   : > { %s1247_s25 = smov (%p28_p0, %s27_s25), 0  ;;  %s1249_s26 = smov (!%p28_p0, %s34_s26), %s1059_s23 }
   0x8   : > { %p36_p3 = scmp.ge.s32.totalorder %s1249_s26, 2  ;;  %p1142_p4 = por %p105_p2, %p104_p1 }
   0x9   : > { %s1149_s29 = sadd.s32 %s1055_s22, %s874_s27  ;;  %s97_s8 = sadd.s32 1, %s1043_s19 }
   0xa   : > { %s1251_s26 = smov (%p36_p3, %s1249_s26), 0  ;;  %p883_p6 = scmp.ge.s32.totalorder %s1063_s24, 4 }
   0xb   : > { %s875_s30 = sshll.u32 %s1251_s26, 1 }
   0xc   : > { %s93_s6 = sadd.s32 %s875_s30, %s1247_s25  ;;  %236 = sbr.rel (%p883_p6) target bundleno = 33 (0x21), region = 24 }
   0xd   : > { %s94_s7 = ssub.s32 %s1149_s29, %s93_s6 }
   0xe   : > { %p95_p5 = scmp.eq.s32.totalorder %s94_s7, 0 }
  0x10   : > { %s1156_s9 = scalar_select %p95_p5, %s1043_s19, %s97_s8  }
  0x11   : > { %239 = sbr.rel (!%p1142_p4) target bundleno = 25 (0x19), region = 28  ;;  %s241_s10 = sand.u32 (%p1142_p4), 1, %s1043_s19  }
  0x12   : > { %s915_s11 = sshll.u32 (%p1142_p4), %s1149_s29, 3  ;;  %s884_s12 = sshll.u32 (%p1142_p4), %s241_s10, 5 }
  0x13   : > { %s248_s15 = scalar_lea.vmem (%p1142_p4), %s1235_s2, %s915_s11  ;;  %s243_s16 = scalar_lea.vmem (%p1142_p4), [#allocation4], %s884_s12 }
  0x14   : > { %v283_v0 = vld [vmem:[%s248_s15] sm:$0xff] (%p1142_p4) }
  0x15   : > { %v285_v1 = vld [vmem:[%s248_s15 + $0x20] sm:$0xff] (%p1142_p4)  ;;  %284 = vst [vmem:[%s243_s16] sm:$0xff] (%p1142_p4), %v283_v0 }
  0x16   : > { %v287_v2 = vld [vmem:[%s248_s15 + $0x40] sm:$0xff]  ;;  %286 = vst [vmem:[%s243_s16 + $0x8] sm:$0xff] %v285_v1 }
  0x17   : > { %288 = vst [vmem:[%s243_s16 + $0x10] sm:$0xff] %v287_v2  ;;  %v289_v3 = vld [vmem:[%s248_s15 + $0x60] sm:$0xff] }
  0x18   : > { %290 = vst [vmem:[%s243_s16 + $0x18] sm:$0xff] %v289_v3 }
  0x19 PF: > { %296 = sbr.rel (!%p1142_p4) target bundleno = 33 (0x21), region = 66  ;;  %s298_s17 = sand.u32 (%p1142_p4), 1, %s1043_s19  }
  0x1a   : > { %s916_s27 = sshll.u32 (%p1142_p4), %s1149_s29, 3  ;;  %s888_s30 = sshll.u32 (%p1142_p4), %s298_s17, 5 }
  0x1b   : > { %s305_s8 = scalar_lea.vmem (%p1142_p4), %s1236_s3, %s916_s27  ;;  %s300_s10 = scalar_lea.vmem (%p1142_p4), [#allocation5], %s888_s30 }
  0x1c   : > { %v340_v4 = vld [vmem:[%s305_s8] sm:$0xff] (%p1142_p4) }
  0x1d   : > { %v342_v5 = vld [vmem:[%s305_s8 + $0x20] sm:$0xff] (%p1142_p4)  ;;  %341 = vst [vmem:[%s300_s10] sm:$0xff] (%p1142_p4), %v340_v4 }
  0x1e   : > { %v344_v6 = vld [vmem:[%s305_s8 + $0x40] sm:$0xff]  ;;  %343 = vst [vmem:[%s300_s10 + $0x8] sm:$0xff] %v342_v5 }
  0x1f   : > { %345 = vst [vmem:[%s300_s10 + $0x10] sm:$0xff] %v344_v6  ;;  %v346_v7 = vld [vmem:[%s305_s8 + $0x60] sm:$0xff] }
  0x20   : > { %347 = vst [vmem:[%s300_s10 + $0x18] sm:$0xff] %v346_v7 }
  0x21 PF: > { %p892_p7 = scmp.ge.s32.totalorder %s1063_s24, 1  ;;  %p364_p8 = scmp.lt.s32.totalorder %s1063_s24, 5 }
  0x23   : > { %p365_p9 = pnand %p892_p7, %p364_p8 }
  0x24   : > { %s371_s28 = sand.u32 (!%p365_p9), 1, %s1039_s18   ;;  %s895_s29 = sshll.u32 (!%p365_p9), %s1051_s21, 1 }
  0x25   : > { %368 = sbr.rel (%p365_p9) target bundleno = 720 (0x2d0), region = 108  ;;  %s893_s11 = sshll.u32 (!%p365_p9), %s371_s28, 5 }
  0x26   : > { %s448_s12 = sadd.s32 (!%p365_p9), %s1047_s20, %s895_s29  ;;  %p457_p10 = scmp.lt.s32.totalorder (!%p365_p9), %s1051_s21, 1 }
  0x27   : > { %s896_s13 = sshll.u32 (!%p365_p9), %s448_s12, 1  ;;  %s373_s18 = scalar_lea.vmem (!%p365_p9), [#allocation4], %s893_s11 }
  0x28   : > { %p450_p11 = scmp.lt.s32.totalorder (!%p365_p9), %s896_s13, 7  ;;  %s380_s7 = scalar_lea.vmem (!%p365_p9), [#allocation5], %s893_s11 }
  0x29   : > { %p899_p12 = scmp.ne.s32.totalorder (!%p365_p9), %s1047_s20, 0 }
  0x2a   : > { %s1253_s21 = smov (!%p457_p10, %s1051_s21), 1  ;;  %s1255_s13 = smov (!%p450_p11, %s896_s13), 7 }
  0x2b   : > { %s917_s14 = sshll.u32 %s1253_s21, 4  ;;  %s452_s17 = scalar_lea.vmem %s1237_s4, %s1255_s13 }
  0x2c   : > { %s1189_s6 = scalar_lea.vmem %s1238_s5, %s917_s14  ;;  %470 = sbr.rel (%p899_p12) target bundleno = 52 (0x34), region = 120 }
  0x31   : > { %vm471_vm0 = vcmask 7168   ;;  %v1065_v8 = vmov -inf   ;;  %v1066_v9 = vmov 0.0  }
  0x32   : > { %472 = vst.msk [vmem:[#allocation2] sm:$0xff] %vm471_vm0, %v1065_v8  ;;  %473 = vst.msk [vmem:[#allocation2 + $0x8] sm:$0xff] %vm471_vm0, %v1065_v8 }
  0x33   : > { %474 = vst.msk [vmem:[#allocation3] sm:$0xff] %vm471_vm0, %v1066_v9  ;;  %475 = vst.msk [vmem:[#allocation3 + $0x8] sm:$0xff] %vm471_vm0, %v1066_v9 }
  0x34 PF: > { %v979_v10 = vld [vmem:[%s380_s7 + $0x14] ss:$8 sps:$4 sm:$0xff]   ;;  %v1067_v12 = vmov 0   ;;  %v983_v13 = vld [vmem:[%s380_s7 + $0x10] ss:$8 sps:$4 sm:$0xff]   ;;  %v991_v19 = vld [vmem:[%s1234_s1] sm:$0xff]   ;;  %v633_v21 = vlaneseq }
  0x35   : > { %v981_v11 = vld [vmem:[%s373_s18 + $0x14] ss:$8 sps:$4 sm:$0xff]   ;;  %549 = vmatprep.mubr.bf16.mxu0 %v1067_v12  ;;  %620 = vmatprep.mubr.bf16.mxu1 %v1067_v12  ;;  %v984_v14 = vld [vmem:[%s373_s18 + $0x10] ss:$8 sps:$4 sm:$0xff]   ;;  %v985_v15 = vld [vmem:[%s380_s7 + $0x4] ss:$8 sps:$4 sm:$0xff]  }
  0x36   : > { %529 = vmatprep.subr.bf16.mxu0 %v979_v10  ;;  %977 = vset.pattern.permute.xlu1 %v1067_v12  ;;  %v987_v16 = vld [vmem:[%s373_s18 + $0x4] ss:$8 sps:$4 sm:$0xff]   ;;  %v989_v17 = vld [vmem:[%s380_s7] ss:$8 sps:$4 sm:$0xff]   ;;  %vm513_vm1 = vcmask 261120   ;;  %v634_v22 = vshrl.u32 %v633_v21, 7 }
  0x37   : > { %600 = vmatprep.subr.bf16.mxu1 %v981_v11  ;;  %978 = vset.pattern.permute.xlu0 %v1067_v12  ;;  %v990_v18 = vld [vmem:[%s373_s18] ss:$8 sps:$4 sm:$0xff]   ;;  %vm697_vm2 = vcmask 7168   ;;  %p912_p13 = scmp.ne.s32.totalorder %s1047_s20, 1 }
  0x38   : > { %530 = vmatpush1.bf16.msra.mxu0 %v983_v13  ;;  %601 = vmatpush1.bf16.msra.mxu1 %v984_v14  ;;  %v992_v20 = vld [vmem:[%s1233_s0] sm:$0xff]   ;;  %v635_v23 = vsub.s32 0, %v634_v22  ;;  %v639_v24 = vsub.s32 1, %v634_v22 }
  0x39   : > { %531 = vmatprep.subr.bf16.mxu0 %v985_v15  ;;  %602 = vmatprep.subr.bf16.mxu1 %v987_v16  ;;  %v631_v25 = vld [vmem:[%s452_s17] sm:$0x3]  ;;  %v648_v49 = vld [vmem:[#allocation2 + $0x8] sm:$0xff] }
  0x3a   : > { %v636_v29 = vrot.slane %v631_v25, %v635_v23  ;;  %v640_v30 = vrot.slane %v631_v25, %v639_v24  ;;  %v647_v46 = vld [vmem:[#allocation2] sm:$0xff]  ;;  %v657_v9 = vld [vmem:[#allocation3] sm:$0xff]  ;;  %v658_v13 = vld [vmem:[#allocation3 + $0x8] sm:$0xff] }
  0x3c   : > { %532 = vmatpush1.bf16.msra.mxu0 %v989_v17  ;;  %603 = vmatpush1.bf16.msra.mxu1 %v990_v18 }
  0x3f   : > { %905 = vmatmul.mubr.msk.bf16.vlgmr.msra.gmra.mxu0 %vm513_vm1, %v991_v19  ;;  %911 = vmatmul.mubr.msk.bf16.vlgmr.msra.gmra.mxu1 %vm513_vm1, %v992_v20 }
  0xff   : > { %v551_v26 = vpop.f32.mrf.mxu0  ;;  %v622_v27 = vpop.f32.mrf.mxu1 }
 0x100   : > { %v623_v28 = vadd.f32 %v622_v27, %v551_v26 }
 0x101   : > { %v553_v31 = vpop.f32.mrf.mxu0  ;;  %v624_v32 = vpop.f32.mrf.mxu1 }
 0x102   : > { %v625_v33 = vadd.f32 %v624_v32, %v553_v31  ;;  %v643_v37 = vadd.f32 %v636_v29, %v623_v28 }
 0x103   : > { %v555_v34 = vpop.f32.mrf.mxu0  ;;  %v626_v35 = vpop.f32.mrf.mxu1 }
 0x104   : > { %v627_v36 = vadd.f32 %v626_v35, %v555_v34  ;;  %v644_v38 = vadd.f32 %v640_v30, %v625_v33 }
 0x105   : > { %v557_v39 = vpop.f32.mrf.mxu0  ;;  %v628_v40 = vpop.f32.mrf.mxu1 }
 0x106   : > { %v629_v41 = vadd.f32 %v628_v40, %v557_v39  ;;  %v649_v42 = vmax.f32 %v643_v37, %v644_v38  ;;  %v645_v43 = vadd.f32 %v636_v29, %v627_v36 }
 0x108   : > { %v646_v44 = vadd.f32 %v640_v30, %v629_v41  ;;  %650 = vmax.xlane.f32.xlu0 %v649_v42 }
 0x10a   : > { %v652_v45 = vmax.f32 %v645_v43, %v646_v44 }
 0x10c   : > { %653 = vmax.xlane.f32.xlu0 %v652_v45 }
 0x191   : > { %v651_v47 = vpop.xlane.xlu0 %650 }
 0x192   : > { %v655_v48 = vmax.f32 %v647_v46, %v651_v47 }
 0x194   : > { %v659_v50 = vsub.f32 %v647_v46, %v655_v48  ;;  %700 = vst.msk [vmem:[#allocation2] sm:$0xff] %vm697_vm2, %v655_v48  ;;  %669 = vperm.xlu1 %977, %v655_v48  }
 0x195   : > { %v654_v51 = vpop.xlane.xlu0 %653 }
 0x196   : > { %v656_v52 = vmax.f32 %v648_v49, %v654_v51  ;;  %v661_v6 = vmul.f32 1.442695, %v659_v50 }
 0x198   : > { %v660_v53 = vsub.f32 %v648_v49, %v656_v52  ;;  %701 = vst.msk [vmem:[#allocation2 + $0x8] sm:$0xff] %vm697_vm2, %v656_v52  ;;  %674 = vperm.xlu1 %977, %v656_v52  }
 0x19a   : > { %v663_v7 = vmul.f32 1.442695, %v660_v53 }
 0x20f   : > { %v670_v54 = vpop.permute.xlu1 %669 }
 0x210   : > { %v677_v55 = vsub.f32 %v643_v37, %v670_v54  ;;  %v678_v56 = vsub.f32 %v644_v38, %v670_v54 }
 0x212   : > { %v681_v57 = vmul.f32 1.442695, %v677_v55  ;;  %v683_v58 = vmul.f32 1.442695, %v678_v56 }
 0x213   : > { %v675_v59 = vpop.permute.xlu1 %674 }
 0x214   : > { %993 = vpow2.f32 %v681_v57  ;;  %v679_v60 = vsub.f32 %v645_v43, %v675_v59  ;;  %v680_v61 = vsub.f32 %v646_v44, %v675_v59 }
 0x215   : > { %995 = vpow2.f32 %v683_v58 }
 0x216   : > { %v685_v62 = vmul.f32 1.442695, %v679_v60  ;;  %v687_v63 = vmul.f32 1.442695, %v680_v61 }
 0x218   : > { %997 = vpow2.f32 %v685_v62 }
 0x219   : > { %999 = vpow2.f32 %v687_v63 }
 0x21a   : > { %1001 = vpow2.f32 %v661_v6 }
 0x21b   : > { %1003 = vpow2.f32 %v663_v7 }
 0x221   : > { %v994_v0 = vpop.eup %993 }
 0x222   : > { %v996_v1 = vpop.eup %995 }
 0x223   : > { %v689_v2 = vadd.f32 %v996_v1, %v994_v0 }
 0x225   : > { %v998_v3 = vpop.eup %997  ;;  %690 = vadd.xlane.f32.xlu0 %v689_v2 }
 0x226   : > { %v1000_v4 = vpop.eup %999 }
 0x227   : > { %v692_v5 = vadd.f32 %v1000_v4, %v998_v3  ;;  %v1002_v8 = vpop.eup %1001 }
 0x228   : > { %v665_v10 = vmul.f32 %v1002_v8, %v657_v9  ;;  %v1004_v11 = vpop.eup %1003 }
 0x229   : > { %693 = vadd.xlane.f32.xlu1 %v692_v5  ;;  %v666_v15 = vmul.f32 %v1004_v11, %v658_v13 }
 0x2ae   : > { %v691_v12 = vpop.xlane.xlu0 %690 }
 0x2af   : > { %v695_v14 = vadd.f32 %v691_v12, %v665_v10 }
 0x2b1   : > { %698 = vst.msk [vmem:[#allocation3] sm:$0xff] %vm697_vm2, %v695_v14  ;;  %705 = sbr.rel (%p912_p13) target bundleno = 720 (0x2d0), region = 124 }
 0x2b2   : > { %v694_v16 = vpop.xlane.xlu1 %693 }
 0x2b3   : > { %v696_v17 = vadd.f32 %v694_v16, %v666_v15 }
 0x2b5   : > { %699 = vst.msk [vmem:[#allocation3 + $0x8] sm:$0xff] %vm697_vm2, %v696_v17 }
 0x2b6   : > { %v706_v21 = vld [vmem:[#allocation2] sm:$0xff]  ;;  %v707_v24 = vld [vmem:[#allocation2 + $0x8] sm:$0xff] }
 0x2b8   : > { %v708_v18 = vld [vmem:[#allocation3] sm:$0xff] }
 0x2b9   : > { %1005 = vlog2.f32 %v708_v18 }
 0x2bc   : > { %v709_v19 = vld [vmem:[#allocation3 + $0x8] sm:$0xff] }
 0x2bd   : > { %1007 = vlog2.f32 %v709_v19 }
 0x2c6   : > { %v1006_v20 = vpop.eup %1005 }
 0x2c7   : > { %v711_v23 = vmul.f32 0.6931472, %v1006_v20 }
 0x2c9   : > { %v714_v26 = vadd.f32 %v711_v23, %v706_v21 }
 0x2ca   : > { %v1008_v22 = vpop.eup %1007 }
 0x2cb   : > { %v713_v25 = vmul.f32 0.6931472, %v1008_v22  ;;  %716 = vst.msk [vmem:[%s1189_s6] sm:$0xff] %vm697_vm2, %v714_v26 }
 0x2cd   : > { %v715_v27 = vadd.f32 %v713_v25, %v707_v24 }
 0x2cf   : > { %717 = vst.msk [vmem:[%s1189_s6 + $0x8] sm:$0xff] %vm697_vm2, %v715_v27 }
 0x2d0 PF: > { %s15_s24 = sadd.s32 1, %s1063_s24   ;;  %s1240_s18 = smov %s1043_s19 }
 0x2d1   : > { %p12_p0 = scmp.ge.s32.totalorder %s15_s24, 6   ;;  %s1241_s19 = smov %s1156_s9 }
 0x2d2   : > { %s1242_s20 = smov %s1055_s22  ;;  %s1243_s21 = smov %s1059_s23 }
 0x2d3   : > { %s1244_s22 = smov %s1247_s25  ;;  %s1245_s23 = smov %s1251_s26 }
 0x2d4   :  { %14 = sbr.rel (!%p12_p0) target bundleno = 4 (0x4), region = 176 }

// kernel: _forward_impl.3
= control target key start
LH: loop header
LB: loop body
LE: loop exit
PB: predicated region body
PF: predicated region fallthrough
CT: control target
= control target key end

     0   :  { %v3415_v0 = vmov 0.0   ;;  %vm124_vm0 = vcmask 261120   ;;  %v3417_v25 = vlaneseq  ;;  %vm737_vm1 = vcmask 1041409   ;;  %s3405_s3 = inlined_call_operand.vmem [shape: f32[160,32], index: 3, kind: input, shape index: {}]   ;;  %s3406_s1 = inlined_call_operand.vmem [shape: f32[16,160], index: 1, kind: input, shape index: {}]   ;;  %s3407_s4 = inlined_call_operand.vmem [shape: f32[1,32], index: 4, kind: input, shape index: {}]   ;;  %s3408_s0 = inlined_call_operand.vmem [shape: f32[16,32,128], index: 0, kind: input, shape index: {}]   ;;  %s3409_s5 = inlined_call_operand.vmem [shape: f32[160,32], index: 5, kind: input, shape index: {}]   ;;  %s3410_s2 = inlined_call_operand.vmem [shape: f32[16,160], index: 2, kind: input, shape index: {}]   ;;  %s3411_s7 = inlined_call_operand.vmem [shape: f32[16,128], index: 7, kind: output, shape index: {0}]   ;;  %s3412_s6 = inlined_call_operand.vmem [shape: f32[1,32], index: 6, kind: input, shape index: {}]   ;;  %s3413_s8 = inlined_call_operand.vmem [shape: bf16[16,32], index: 8, kind: output, shape index: {1}]   ;;  %s3414_s9 = inlined_call_operand.vmem [shape: bf16[16,32], index: 9, kind: output, shape index: {2}]  }
   0x1   :  { %131 = vmatprep.subr.mxu0 %v3415_v0  ;;  %v112_v1 = vld [vmem:[%s3405_s3 + $0x78] sm:$0xff]  ;;  %v111_v2 = vld [vmem:[%s3405_s3 + $0x70] sm:$0xff]  ;;  %2104 = vmatprep.subr.mxu1 %v3415_v0  ;;  %v110_v3 = vld [vmem:[%s3405_s3 + $0x68] sm:$0xff]  ;;  %vm739_vm2 = vcmask 1042434   ;;  %vm741_vm3 = vcmask 1043459   ;;  %vm743_vm4 = vcmask 1044484  }
   0x2   :  { %132 = vmatpush1.msra.mxu0 %v112_v1  ;;  %v109_v4 = vld [vmem:[%s3405_s3 + $0x60] sm:$0xff]  ;;  %v108_v5 = vld [vmem:[%s3405_s3 + $0x58] sm:$0xff]  ;;  %v94_v6 = vld [vmem:[%s3406_s1 + $0x8] sm:$0xff]  ;;  %v2379_v26 = vshrl.u32 %v3417_v25, 7  ;;  %vm745_vm5 = vcmask 1045509   ;;  %vm747_vm6 = vcmask 1046534  }
   0x3   :  { %133 = vmatprep.subr.mxu0 %v3415_v0  ;;  %2204 = vmatprep.mubr.msk.f32.mxu0 %vm124_vm0, %v94_v6  ;;  %v107_v7 = vld [vmem:[%s3405_s3 + $0x50] sm:$0xff]  ;;  %v106_v8 = vld [vmem:[%s3405_s3 + $0x48] sm:$0xff]  ;;  %v105_v9 = vld [vmem:[%s3405_s3 + $0x40] sm:$0xff]  ;;  %vm749_vm7 = vcmask 1047559   ;;  %vm1745_vm9 = vcmask 130112   ;;  %vm1752_vm10 = vcmask 195712  }
   0x4   :  { %134 = vmatpush1.msra.mxu0 %v111_v2  ;;  %v104_v10 = vld [vmem:[%s3405_s3 + $0x38] sm:$0xff]  ;;  %v103_v11 = vld [vmem:[%s3405_s3 + $0x30] sm:$0xff]  ;;  %v102_v12 = vld [vmem:[%s3405_s3 + $0x28] sm:$0xff]  ;;  %v227_v28 = vsub.s32 1, %v2379_v26  ;;  %v2386_v29 = vsub.s32 0, %v2379_v26  ;;  %v246_v37 = vsub.s32 2, %v2379_v26 }
   0x5   :  { %135 = vmatprep.subr.mxu0 %v3415_v0  ;;  %v101_v13 = vld [vmem:[%s3405_s3 + $0x20] sm:$0xff]  ;;  %v100_v14 = vld [vmem:[%s3405_s3 + $0x18] sm:$0xff]  ;;  %v99_v15 = vld [vmem:[%s3405_s3 + $0x10] sm:$0xff]  ;;  %v265_v39 = vsub.s32 3, %v2379_v26  ;;  %v284_v41 = vsub.s32 4, %v2379_v26  ;;  %v303_v43 = vsub.s32 5, %v2379_v26 }
   0x6   :  { %136 = vmatpush1.msra.mxu0 %v110_v3  ;;  %v98_v16 = vld [vmem:[%s3405_s3 + $0x8] sm:$0xff]  ;;  %v97_v17 = vld [vmem:[%s3405_s3] sm:$0xff]  ;;  %v116_v18 = vld [vmem:[%s3405_s3 + $0x98] sm:$0xff]  ;;  %v322_v45 = vsub.s32 6, %v2379_v26  ;;  %v341_v47 = vsub.s32 7, %v2379_v26  ;;  %vm1759_vm11 = vcmask 261312  }
   0x7   :  { %137 = vmatprep.subr.mxu0 %v3415_v0  ;;  %v115_v19 = vld [vmem:[%s3405_s3 + $0x90] sm:$0xff]  ;;  %v114_v20 = vld [vmem:[%s3405_s3 + $0x88] sm:$0xff]  ;;  %v113_v21 = vld [vmem:[%s3405_s3 + $0x80] sm:$0xff]  ;;  %vm2064_vm12 = vcmask 257024  }
   0x8   :  { %138 = vmatpush1.msra.mxu0 %v109_v4  ;;  %v93_v22 = vld [vmem:[%s3406_s1] sm:$0xff]  ;;  %v96_v23 = vld [vmem:[%s3406_s1 + $0x18] sm:$0xff]  ;;  %v95_v24 = vld [vmem:[%s3406_s1 + $0x10] sm:$0xff] }
   0x9   :  { %139 = vmatprep.subr.mxu0 %v3415_v0  ;;  %v2203_v27 = vld [vmem:[%s3407_s4] ss:$0 sm:$0xff] }
   0xa   :  { %140 = vmatpush1.msra.mxu0 %v108_v5 }
   0xb   :  { %141 = vmatprep.subr.mxu0 %v3415_v0 }
   0xc   :  { %142 = vmatpush1.msra.mxu0 %v107_v7 }
   0xd   :  { %143 = vmatprep.subr.mxu0 %v3415_v0 }
   0xe   :  { %144 = vmatpush1.msra.mxu0 %v106_v8 }
   0xf   :  { %145 = vmatprep.subr.mxu0 %v3415_v0 }
  0x10   :  { %146 = vmatpush1.msra.mxu0 %v105_v9 }
  0x11   :  { %147 = vmatprep.subr.mxu0 %v3415_v0 }
  0x12   :  { %148 = vmatpush1.msra.mxu0 %v104_v10 }
  0x13   :  { %149 = vmatprep.subr.mxu0 %v3415_v0 }
  0x14   :  { %150 = vmatpush1.msra.mxu0 %v103_v11 }
  0x15   :  { %151 = vmatprep.subr.mxu0 %v3415_v0 }
  0x16   :  { %152 = vmatpush1.msra.mxu0 %v102_v12 }
  0x17   :  { %153 = vmatprep.subr.mxu0 %v3415_v0 }
  0x18   :  { %154 = vmatpush1.msra.mxu0 %v101_v13 }
  0x19   :  { %155 = vmatprep.subr.mxu0 %v3415_v0 }
  0x1a   :  { %156 = vmatpush1.msra.mxu0 %v100_v14 }
  0x1b   :  { %157 = vmatprep.subr.mxu0 %v3415_v0 }
  0x1c   :  { %158 = vmatpush1.msra.mxu0 %v99_v15 }
  0x1d   :  { %159 = vmatprep.subr.mxu0 %v3415_v0 }
  0x1e   :  { %160 = vmatpush1.msra.mxu0 %v98_v16 }
  0x1f   :  { %161 = vmatprep.subr.mxu0 %v3415_v0 }
  0x20   :  { %162 = vmatpush1.msra.mxu0 %v97_v17 }
  0x21   :  { %187 = vmatprep.subr.mxu0 %v3415_v0 }
  0x22   :  { %188 = vmatpush2.msra.mxu0 %v116_v18 }
  0x23   :  { %189 = vmatprep.subr.mxu0 %v3415_v0 }
  0x24   :  { %190 = vmatpush2.msra.mxu0 %v115_v19 }
  0x25   :  { %191 = vmatprep.subr.mxu0 %v3415_v0 }
  0x26   :  { %192 = vmatpush2.msra.mxu0 %v114_v20 }
  0x27   :  { %193 = vmatprep.subr.mxu0 %v3415_v0  ;;  %v2561_v0 = vld [vmem:[%s3408_s0 + $0x88] sm:$0xff] }
  0x28   :  { %194 = vmatpush2.msra.mxu0 %v113_v21  ;;  %3474 = vst [vmem:[#allocation11_spill] sm:$0xff] %v2561_v0 }
  0x29   :  { %196 = vmatmul.mubr.f32.vlgmr.msra.gmra.mxu0 %v93_v22 }
  0x2a   :  { %2205 = vmatprep.mubr.msk.f32.mxu0 %vm124_vm0, %v96_v23 }
  0x2d   :  { %201 = vmatmul.mubr.f32.gmra.mxu0 %v95_v24 }
  0xe9   :  { %v197_v30 = vpop.f32.mrf.mxu0 }
  0xea   :  { %v198_v31 = vadd.f32 %v2203_v27, %v197_v30  ;;  %v2439_v30 = vld [vmem:[%s3408_s0 + $0x28] sm:$0xff] }
  0xeb   :  { %v199_v32 = vpop.f32.mrf.mxu0 }
  0xec   :  { %v228_v33 = vrot.slane %v198_v31, %v227_v28  ;;  %v209_v34 = vrot.slane %v198_v31, %v2386_v29  ;;  %v247_v38 = vrot.slane %v198_v31, %v246_v37  ;;  %v266_v40 = vrot.slane %v198_v31, %v265_v39 }
  0xed   :  { %v202_v35 = vpop.f32.mrf.mxu0  ;;  %v285_v42 = vrot.slane %v198_v31, %v284_v41  ;;  %v304_v44 = vrot.slane %v198_v31, %v303_v43  ;;  %v323_v46 = vrot.slane %v198_v31, %v322_v45  ;;  %v342_v48 = vrot.slane %v198_v31, %v341_v47 }
  0xee   :  { %230 = vbcast.lane.b32.xlu1 %v228_v33, 256  ;;  %211 = vbcast.lane.b32.xlu0 %v209_v34, 256  ;;  %v203_v49 = vadd.f32 %v2203_v27, %v202_v35 }
  0xef   :  { %v204_v36 = vpop.f32.mrf.mxu0 }
  0xf0   :  { %v361_v50 = vrot.slane %v203_v49, %v2386_v29  ;;  %v380_v51 = vrot.slane %v203_v49, %v227_v28  ;;  %v399_v52 = vrot.slane %v203_v49, %v246_v37  ;;  %v418_v53 = vrot.slane %v203_v49, %v265_v39  ;;  %v2459_v36 = vld [vmem:[%s3408_s0 + $0x38] sm:$0xff] }
  0xf1   :  { %v437_v54 = vrot.slane %v203_v49, %v284_v41  ;;  %v456_v55 = vrot.slane %v203_v49, %v303_v43  ;;  %v475_v56 = vrot.slane %v203_v49, %v322_v45  ;;  %v494_v57 = vrot.slane %v203_v49, %v341_v47  ;;  %v2470_v41 = vld [vmem:[%s3408_s0 + $0x8] sm:$0xff]  ;;  %v2481_v45 = vld [vmem:[%s3408_s0 + $0x10] sm:$0xff] }
  0xf2   :  { %234 = vbcast.lane.b32.xlu1 %v228_v33, 264  ;;  %215 = vbcast.lane.b32.xlu0 %v209_v34, 264 }
  0xf6   :  { %253 = vbcast.lane.b32.xlu1 %v247_v38, 264  ;;  %249 = vbcast.lane.b32.xlu0 %v247_v38, 256 }
  0xfa   :  { %238 = vbcast.lane.b32.xlu1 %v228_v33, 272  ;;  %219 = vbcast.lane.b32.xlu0 %v209_v34, 272 }
  0xfe   :  { %272 = vbcast.lane.b32.xlu1 %v266_v40, 264  ;;  %268 = vbcast.lane.b32.xlu0 %v266_v40, 256 }
 0x102   :  { %287 = vbcast.lane.b32.xlu1 %v285_v42, 256  ;;  %257 = vbcast.lane.b32.xlu0 %v247_v38, 272 }
 0x106   :  { %242 = vbcast.lane.b32.xlu1 %v228_v33, 280  ;;  %291 = vbcast.lane.b32.xlu0 %v285_v42, 264  ;;  %v2448_v33 = vld [vmem:[%s3408_s0 + $0x20] sm:$0xff] }
 0x10a   :  { %306 = vbcast.lane.b32.xlu1 %v304_v44, 256  ;;  %223 = vbcast.lane.b32.xlu0 %v209_v34, 280  ;;  %v2453_v34 = vld [vmem:[%s3408_s0 + $0x30] sm:$0xff] }
 0x10b   :  { %3465 = vst [vmem:[#allocation2_spill] sm:$0xff] %v2453_v34 }
 0x10e   :  { %295 = vbcast.lane.b32.xlu1 %v285_v42, 272  ;;  %276 = vbcast.lane.b32.xlu0 %v266_v40, 272 }
 0x112   :  { %329 = vbcast.lane.b32.xlu1 %v323_v46, 264  ;;  %310 = vbcast.lane.b32.xlu0 %v304_v44, 264 }
 0x116   :  { %314 = vbcast.lane.b32.xlu1 %v304_v44, 272  ;;  %261 = vbcast.lane.b32.xlu0 %v247_v38, 280 }
 0x11a   :  { %348 = vbcast.lane.b32.xlu1 %v342_v48, 264  ;;  %325 = vbcast.lane.b32.xlu0 %v323_v46, 256 }
 0x11e   :  { %333 = vbcast.lane.b32.xlu1 %v323_v46, 272  ;;  %280 = vbcast.lane.b32.xlu0 %v266_v40, 280 }
 0x122   :  { %352 = vbcast.lane.b32.xlu1 %v342_v48, 272  ;;  %344 = vbcast.lane.b32.xlu0 %v342_v48, 256 }
 0x126   :  { %367 = vbcast.lane.b32.xlu1 %v361_v50, 264  ;;  %299 = vbcast.lane.b32.xlu0 %v285_v42, 280 }
 0x12a   :  { %386 = vbcast.lane.b32.xlu1 %v380_v51, 264  ;;  %318 = vbcast.lane.b32.xlu0 %v304_v44, 280  ;;  %v2476_v44 = vld [vmem:[%s3408_s0] sm:$0xff] }
 0x12e   :  { %405 = vbcast.lane.b32.xlu1 %v399_v52, 264  ;;  %337 = vbcast.lane.b32.xlu0 %v323_v46, 280 }
 0x132   :  { %390 = vbcast.lane.b32.xlu1 %v380_v51, 272  ;;  %363 = vbcast.lane.b32.xlu0 %v361_v50, 256 }
 0x136   :  { %424 = vbcast.lane.b32.xlu1 %v418_v53, 264  ;;  %382 = vbcast.lane.b32.xlu0 %v380_v51, 256 }
 0x13a   :  { %409 = vbcast.lane.b32.xlu1 %v399_v52, 272  ;;  %401 = vbcast.lane.b32.xlu0 %v399_v52, 256 }
 0x13e   :  { %443 = vbcast.lane.b32.xlu1 %v437_v54, 264  ;;  %371 = vbcast.lane.b32.xlu0 %v361_v50, 272 }
 0x142   :  { %375 = vbcast.lane.b32.xlu1 %v361_v50, 280  ;;  %420 = vbcast.lane.b32.xlu0 %v418_v53, 256  ;;  %v2491_v50 = vld [vmem:[%s3408_s0 + $0x18] sm:$0xff] }
 0x146   :  { %428 = vbcast.lane.b32.xlu1 %v418_v53, 272  ;;  %439 = vbcast.lane.b32.xlu0 %v437_v54, 256 }
 0x14a   :  { %462 = vbcast.lane.b32.xlu1 %v456_v55, 264  ;;  %394 = vbcast.lane.b32.xlu0 %v380_v51, 280 }
 0x14e   :  { %447 = vbcast.lane.b32.xlu1 %v437_v54, 272  ;;  %458 = vbcast.lane.b32.xlu0 %v456_v55, 256 }
 0x152   :  { %481 = vbcast.lane.b32.xlu1 %v475_v56, 264  ;;  %413 = vbcast.lane.b32.xlu0 %v399_v52, 280 }
 0x156   :  { %466 = vbcast.lane.b32.xlu1 %v456_v55, 272  ;;  %477 = vbcast.lane.b32.xlu0 %v475_v56, 256 }
 0x15a   :  { %500 = vbcast.lane.b32.xlu1 %v494_v57, 264  ;;  %432 = vbcast.lane.b32.xlu0 %v418_v53, 280 }
 0x15e   :  { %485 = vbcast.lane.b32.xlu1 %v475_v56, 272  ;;  %496 = vbcast.lane.b32.xlu0 %v494_v57, 256 }
 0x160   :  { %v231_v58 = vpop.permute.xlu1 %230  ;;  %v212_v59 = vpop.permute.xlu0 %211 }
 0x161   :  { %v514_v39 = vmul.f32 %v231_v58, %v2448_v33  ;;  %v510_v51 = vmul.f32 %v212_v59, %v2476_v44 }
 0x162   :  { %504 = vbcast.lane.b32.xlu1 %v494_v57, 272  ;;  %451 = vbcast.lane.b32.xlu0 %v437_v54, 280  ;;  %v2498_v54 = vld [vmem:[%s3408_s0 + $0x48] sm:$0xff] }
 0x163   :  { %3466 = vst [vmem:[#allocation3_spill] sm:$0xff] %v2498_v54 }
 0x164   :  { %v235_v60 = vpop.permute.xlu1 %234  ;;  %v216_v61 = vpop.permute.xlu0 %215 }
 0x165   :  { %v515_v35 = vmul.f32 %v235_v60, %v2439_v30  ;;  %v2513_v60 = vld [vmem:[%s3408_s0 + $0x50] sm:$0xff] }
 0x166   :  { %489 = vbcast.lane.b32.xlu1 %v475_v56, 280  ;;  %470 = vbcast.lane.b32.xlu0 %v456_v55, 280  ;;  %v2503_v55 = vld [vmem:[%s3408_s0 + $0x40] sm:$0xff]  ;;  %3468 = vst [vmem:[#allocation5_spill] sm:$0xff] %v2513_v60 }
 0x167   :  { %v583_v42 = vadd.f32 %v515_v35, %v514_v39  ;;  %3467 = vst [vmem:[#allocation4_spill] sm:$0xff] %v2503_v55  ;;  %v2520_v35 = vld [vmem:[%s3408_s0 + $0x58] sm:$0xff] }
 0x168   :  { %v254_v62 = vpop.permute.xlu1 %253  ;;  %v250_v63 = vpop.permute.xlu0 %249  ;;  %3469 = vst [vmem:[#allocation6_spill] sm:$0xff] %v2520_v35 }
 0x16a   :  { %508 = vbcast.lane.b32.xlu1 %v494_v57, 280  ;;  %356 = vbcast.lane.b32.xlu0 %v342_v48, 280  ;;  %v511_v48 = vmul.f32 %v216_v61, %v2470_v41  ;;  %v519_v61 = vmul.f32 %v254_v62, %v2498_v54  ;;  %v2530_v62 = vld [vmem:[%s3408_s0 + $0x68] sm:$0xff] }
 0x16b   :  { %3470 = vst [vmem:[#allocation7_spill] sm:$0xff] %v2530_v62  ;;  %v2637_v54 = vld [vmem:[%s3408_s0 + $0x148] sm:$0xff] }
 0x16c   :  { %v239_v1 = vpop.permute.xlu1 %238  ;;  %v220_v2 = vpop.permute.xlu0 %219  ;;  %v574_v58 = vadd.f32 %v511_v48, %v510_v51  ;;  %v2541_v51 = vld [vmem:[%s3408_s0 + $0x70] sm:$0xff]  ;;  %3485 = vst [vmem:[#allocation21_spill] sm:$0xff] %v2637_v54 }
 0x16d   :  { %v516_v40 = vmul.f32 %v239_v1, %v2453_v34  ;;  %v512_v52 = vmul.f32 %v220_v2, %v2481_v45  ;;  %v518_v1 = vmul.f32 %v250_v63, %v2503_v55  ;;  %v2535_v63 = vld [vmem:[%s3408_s0 + $0x60] sm:$0xff]  ;;  %3472 = vst [vmem:[#allocation9_spill] sm:$0xff] %v2541_v51  ;;  %v2642_v34 = vld [vmem:[%s3408_s0 + $0x110] sm:$0xff] }
 0x16e   :  { %3471 = vst [vmem:[#allocation8_spill] sm:$0xff] %v2535_v63  ;;  %3486 = vst [vmem:[#allocation22_spill] sm:$0xff] %v2642_v34 }
 0x16f   :  { %v584_v49 = vadd.f32 %v583_v42, %v516_v40  ;;  %v575_v2 = vadd.f32 %v574_v58, %v512_v52 }
 0x170   :  { %v2396_v3 = vpop.permute.xlu1 %272  ;;  %v2398_v4 = vpop.permute.xlu0 %268 }
 0x171   :  { %v523_v58 = vmul.f32 %v2396_v3, %v2530_v62  ;;  %v2613_v62 = vld [vmem:[%s3408_s0 + $0x140] sm:$0xff] }
 0x172   :  { %3482 = vst [vmem:[#allocation19_spill] sm:$0xff] %v2613_v62 }
 0x174   :  { %v2400_v5 = vpop.permute.xlu1 %287  ;;  %v258_v6 = vpop.permute.xlu0 %257 }
 0x178   :  { %v243_v7 = vpop.permute.xlu1 %242  ;;  %v2402_v8 = vpop.permute.xlu0 %291 }
 0x179   :  { %v517_v43 = vmul.f32 %v243_v7, %v2459_v36 }
 0x17b   :  { %v585_v53 = vadd.f32 %v584_v49, %v517_v43  ;;  %v592_v43 = vadd.f32 %v519_v61, %v518_v1 }
 0x17c   :  { %v2404_v9 = vpop.permute.xlu1 %306  ;;  %v224_v10 = vpop.permute.xlu0 %223 }
 0x17d   :  { %v513_v59 = vmul.f32 %v224_v10, %v2491_v50  ;;  %v586_v7 = vrot.slane %v585_v53, 4  ;;  %v520_v10 = vmul.f32 %v258_v6, %v2513_v60 }
 0x17f   :  { %v576_v42 = vadd.f32 %v575_v2, %v513_v59  ;;  %v587_v48 = vadd.f32 %v586_v7, %v585_v53  ;;  %v522_v59 = vmul.f32 %v2398_v4, %v2535_v63  ;;  %v593_v2 = vadd.f32 %v592_v43, %v520_v10  ;;  %v2572_v63 = vld [vmem:[%s3408_s0 + $0x80] sm:$0xff] }
 0x180   :  { %v2406_v11 = vpop.permute.xlu1 %295  ;;  %v2408_v12 = vpop.permute.xlu0 %276  ;;  %3475 = vst [vmem:[#allocation12_spill] sm:$0xff] %v2572_v63 }
 0x181   :  { %v577_v61 = vrot.slane %v576_v42, 4  ;;  %v588_v53 = vrot.slane %v587_v48, 2  ;;  %v524_v1 = vmul.f32 %v2408_v12, %v2541_v51  ;;  %v601_v10 = vadd.f32 %v523_v58, %v522_v59 }
 0x183   :  { %v578_v43 = vadd.f32 %v577_v61, %v576_v42  ;;  %v589_v12 = vadd.f32 %v588_v53, %v587_v48  ;;  %v602_v51 = vadd.f32 %v601_v10, %v524_v1  ;;  %v2589_v42 = vld [vmem:[%s3408_s0 + $0xa0] sm:$0xff]  ;;  %v526_v61 = vmul.f32 %v2400_v5, %v2572_v63  ;;  %v2603_v10 = vld [vmem:[%s3408_s0 + $0x128] sm:$0xff] }
 0x184   :  { %v2410_v13 = vpop.permute.xlu1 %329  ;;  %v2412_v14 = vpop.permute.xlu0 %310  ;;  %3478 = vst [vmem:[#allocation15_spill] sm:$0xff] %v2589_v42  ;;  %3480 = vst [vmem:[#allocation17_spill] sm:$0xff] %v2603_v10 }
 0x185   :  { %v579_v53 = vrot.slane %v578_v43, 2 }
 0x188   :  { %v2414_v15 = vpop.permute.xlu1 %314  ;;  %v262_v16 = vpop.permute.xlu0 %261 }
 0x189   :  { %v521_v49 = vmul.f32 %v262_v16, %v2520_v35  ;;  %v2554_v16 = vld [vmem:[%s3408_s0 + $0x78] sm:$0xff]  ;;  %v590_v35 = vrot.slane %v589_v12, 1 }
 0x18a   :  { %3473 = vst [vmem:[#allocation10_spill] sm:$0xff] %v2554_v16 }
 0x18b   :  { %v594_v7 = vadd.f32 %v593_v2, %v521_v49  ;;  %v527_v49 = vmul.f32 %v2402_v8, %v2561_v0  ;;  %v2579_v2 = vld [vmem:[%s3408_s0 + $0x90] sm:$0xff]  ;;  %v2594_v8 = vld [vmem:[%s3408_s0 + $0x108] sm:$0xff]  ;;  %v3484_v0 = vlaneseq }
 0x18c   :  { %v2416_v17 = vpop.permute.xlu1 %348  ;;  %v2418_v18 = vpop.permute.xlu0 %325  ;;  %3476 = vst [vmem:[#allocation13_spill] sm:$0xff] %v2579_v2  ;;  %3479 = vst [vmem:[#allocation16_spill] sm:$0xff] %v2594_v8  ;;  %v528_v5 = vmul.f32 %v2406_v11, %v2579_v2  ;;  %v530_v11 = vmul.f32 %v2404_v9, %v2589_v42  ;;  %v2666_v42 = vadd.f32 %v579_v53, %v578_v43 }
 0x18d   :  { %v595_v58 = vrot.slane %v594_v7, 4  ;;  %v2630_v60 = vand.u32 127, %v3484_v0  ;;  %v610_v55 = vadd.f32 %v527_v49, %v526_v61  ;;  %v2647_v0 = vld [vmem:[%s3408_s0 + $0xc8] sm:$0xff] }
 0x18e   :  { %3487 = vst [vmem:[#allocation23_spill] sm:$0xff] %v2647_v0 }
 0x18f   :  { %v596_v2 = vadd.f32 %v595_v58, %v594_v7  ;;  %v2656_v7 = vld [vmem:[%s3408_s0 + $0x130] sm:$0xff]  ;;  %vm720_vm8 = vcmp.lt.s32.totalorder %v2630_v60, 16 }
 0x190   :  { %v2420_v19 = vpop.permute.xlu1 %333  ;;  %v2422_v20 = vpop.permute.xlu0 %280  ;;  %3488 = vst [vmem:[#allocation24_spill] sm:$0xff] %v2656_v7 }
 0x191   :  { %v525_v25 = vmul.f32 %v2422_v20, %v2554_v16  ;;  %v2584_v20 = vld [vmem:[%s3408_s0 + $0x120] sm:$0xff] }
 0x192   :  { %3477 = vst [vmem:[#allocation14_spill] sm:$0xff] %v2584_v20  ;;  %v2608_v16 = vld [vmem:[%s3408_s0 + $0x100] sm:$0xff] }
 0x193   :  { %v603_v1 = vadd.f32 %v602_v51, %v525_v25  ;;  %3481 = vst [vmem:[#allocation18_spill] sm:$0xff] %v2608_v16  ;;  %v2620_v25 = vld [vmem:[%s3408_s0 + $0xa8] sm:$0xff]  ;;  %v2625_v51 = vld [vmem:[%s3408_s0 + $0x98] sm:$0xff] }
 0x194   :  { %v2424_v21 = vpop.permute.xlu1 %352  ;;  %v2426_v22 = vpop.permute.xlu0 %344  ;;  %3483 = vst [vmem:[#allocation20_spill] sm:$0xff] %v2620_v25 }
 0x198   :  { %v2428_v23 = vpop.permute.xlu1 %367  ;;  %v2430_v24 = vpop.permute.xlu0 %299 }
 0x19c   :  { %v2432_v27 = vpop.permute.xlu1 %386  ;;  %v2434_v28 = vpop.permute.xlu0 %318 }
 0x19d   :  { %v547_v9 = vmul.f32 %v2432_v27, %v2603_v10  ;;  %v604_v27 = vrot.slane %v603_v1, 4  ;;  %v529_v10 = vmul.f32 %v2430_v24, %v2625_v51  ;;  %v535_v24 = vmul.f32 %v2410_v13, %v2647_v0  ;;  %v2710_v13 = vld [vmem:[%s3408_s0 + $0xc0] sm:$0xff] }
 0x1a0   :  { %v2441_v31 = vpop.permute.xlu1 %405  ;;  %v2443_v32 = vpop.permute.xlu0 %337 }
 0x1a1   :  { %v551_v43 = vmul.f32 %v2441_v31, %v2637_v54  ;;  %v2700_v31 = vld [vmem:[%s3408_s0 + $0x158] sm:$0xff] }
 0x1a2   :  { %3491 = vst [vmem:[#allocation27_spill] sm:$0xff] %v2700_v31 }
 0x1a4   :  { %v2461_v37 = vpop.permute.xlu1 %390  ;;  %v2463_v38 = vpop.permute.xlu0 %363 }
 0x1a5   :  { %v542_v49 = vmul.f32 %v2463_v38, %v2608_v16  ;;  %v2675_v38 = vld [vmem:[%s3408_s0 + $0x118] sm:$0xff]  ;;  %v597_v16 = vrot.slane %v596_v2, 2 }
 0x1a8   :  { %v2483_v46 = vpop.permute.xlu1 %424  ;;  %v2485_v47 = vpop.permute.xlu0 %382 }
 0x1a9   :  { %v546_v63 = vmul.f32 %v2485_v47, %v2584_v20  ;;  %v543_v47 = vmul.f32 %v2428_v23, %v2594_v8  ;;  %v531_v23 = vmul.f32 %v2412_v14, %v2620_v25  ;;  %v2686_v25 = vadd.f32 %v590_v35, %v589_v12  ;;  %v2705_v35 = vld [vmem:[%s3408_s0 + $0xb0] sm:$0xff]  ;;  %v2717_v12 = vld [vmem:[%s3408_s0 + $0x160] sm:$0xff] }
 0x1aa   :  { %v548_v8 = vmul.f32 %v2461_v37, %v2656_v7  ;;  %3492 = vst [vmem:[#allocation28_spill] sm:$0xff] %v2717_v12  ;;  %v581_v7 = vrot.slane %v2666_v42, 1 }
 0x1ab   :  { %v655_v53 = vadd.f32 %v547_v9, %v546_v63  ;;  %v646_v37 = vadd.f32 %v543_v47, %v542_v49  ;;  %v619_v0 = vadd.f32 %v531_v23, %v530_v11  ;;  %v2726_v47 = vld [vmem:[%s3408_s0 + $0xe0] sm:$0xff]  ;;  %v2731_v49 = vld [vmem:[%s3408_s0 + $0xd0] sm:$0xff]  ;;  %v532_v23 = vmul.f32 %v2414_v15, %v2705_v35 }
 0x1ac   :  { %v2505_v56 = vpop.permute.xlu1 %409  ;;  %v2507_v57 = vpop.permute.xlu0 %401  ;;  %3493 = vst [vmem:[#allocation29_spill] sm:$0xff] %v2726_v47  ;;  %v538_v15 = vmul.f32 %v2426_v22, %v2726_v47 }
 0x1ad   :  { %v550_v58 = vmul.f32 %v2507_v57, %v2613_v62  ;;  %v2680_v57 = vld [vmem:[%s3408_s0 + $0x138] sm:$0xff]  ;;  %v611_v62 = vadd.f32 %v610_v55, %v528_v5  ;;  %v2695_v55 = vld [vmem:[%s3408_s0 + $0x150] sm:$0xff] }
 0x1ae   :  { %3489 = vst [vmem:[#allocation25_spill] sm:$0xff] %v2680_v57  ;;  %3490 = vst [vmem:[#allocation26_spill] sm:$0xff] %v2695_v55  ;;  %v552_v11 = vmul.f32 %v2505_v56, %v2695_v55  ;;  %v534_v56 = vmul.f32 %v2418_v18, %v2710_v13  ;;  %v536_v55 = vmul.f32 %v2420_v19, %v2731_v49 }
 0x1af   :  { %v620_v19 = vadd.f32 %v619_v0, %v532_v23 }
 0x1b0   :  { %v2522_v39 = vpop.permute.xlu1 %443  ;;  %v2524_v40 = vpop.permute.xlu0 %371 }
 0x1b1   :  { %v544_v14 = vmul.f32 %v2524_v40, %v2642_v34  ;;  %v664_v40 = vadd.f32 %v551_v43, %v550_v58  ;;  %v605_v34 = vadd.f32 %v604_v27, %v603_v1  ;;  %v2743_v58 = vld [vmem:[%s3408_s0 + $0x170] sm:$0xff]  ;;  %v598_v27 = vadd.f32 %v597_v16, %v596_v2  ;;  %v2751_v43 = vld [vmem:[%s3408_s0 + $0xe8] sm:$0xff]  ;;  %v2767_v16 = vld [vmem:[%s3408_s0 + $0xd8] sm:$0xff] }
 0x1b2   :  { %3495 = vst [vmem:[#allocation31_spill] sm:$0xff] %v2743_v58  ;;  %3496 = vst [vmem:[#allocation32_spill] sm:$0xff] %v2751_v43 }
 0x1b3   :  { %v647_v1 = vadd.f32 %v646_v37, %v544_v14  ;;  %v2758_v14 = vld [vmem:[%s3408_s0 + $0xb8] sm:$0xff]  ;;  %3497 = vst [vmem:[#allocation33_spill] sm:$0xff] %v2767_v16 }
 0x1b4   :  { %v2543_v6 = vpop.permute.xlu1 %375  ;;  %v2545_v52 = vpop.permute.xlu0 %420 }
 0x1b5   :  { %v545_v63 = vmul.f32 %v2543_v6, %v2675_v38  ;;  %v612_v6 = vadd.f32 %v611_v62, %v529_v10  ;;  %v656_v62 = vadd.f32 %v655_v53, %v548_v8  ;;  %v665_v53 = vadd.f32 %v664_v40, %v552_v11 }
 0x1b6   :  { %v533_v40 = vmul.f32 %v2434_v28, %v2758_v14  ;;  %v628_v11 = vadd.f32 %v535_v24, %v534_v56 }
 0x1b7   :  { %v648_v2 = vadd.f32 %v647_v1, %v545_v63  ;;  %v613_v47 = vrot.slane %v612_v6, 4  ;;  %v599_v1 = vrot.slane %v598_v27, 1 }
 0x1b8   :  { %v2563_v3 = vpop.permute.xlu1 %428  ;;  %v2565_v4 = vpop.permute.xlu0 %439  ;;  %v629_v23 = vadd.f32 %v628_v11, %v536_v55  ;;  %v2815_v55 = vld [vmem:[%s3408_s0 + $0x190] sm:$0xff]  ;;  %v2832_v11 = vld [vmem:[%s3408_s0 + $0x1c0] sm:$0xff] }
 0x1b9   :  { %v556_v22 = vmul.f32 %v2563_v3, %v2743_v58  ;;  %v649_v28 = vrot.slane %v648_v2, 4  ;;  %3502 = vst [vmem:[#allocation38_spill] sm:$0xff] %v2815_v55  ;;  %3504 = vst [vmem:[#allocation40_spill] sm:$0xff] %v2832_v11 }
 0x1bc   :  { %v2596_v48 = vpop.permute.xlu1 %462  ;;  %v395_v59 = vpop.permute.xlu0 %394 }
 0x1bd   :  { %v549_v5 = vmul.f32 %v395_v59, %v2680_v57  ;;  %v2736_v59 = vld [vmem:[%s3408_s0 + $0x168] sm:$0xff] }
 0x1be   :  { %3494 = vst [vmem:[#allocation30_spill] sm:$0xff] %v2736_v59 }
 0x1bf   :  { %v657_v8 = vadd.f32 %v656_v62, %v549_v5  ;;  %v2784_v5 = vld [vmem:[%s3408_s0 + $0x178] sm:$0xff] }
 0x1c0   :  { %v2662_v61 = vpop.permute.xlu1 %447  ;;  %v2664_v20 = vpop.permute.xlu0 %458  ;;  %3498 = vst [vmem:[#allocation34_spill] sm:$0xff] %v2784_v5 }
 0x1c4   :  { %v2720_v9 = vpop.permute.xlu1 %481  ;;  %v414_v54 = vpop.permute.xlu0 %413 }
 0x1c5   :  { %v553_v10 = vmul.f32 %v414_v54, %v2700_v31  ;;  %v554_v54 = vmul.f32 %v2545_v52, %v2717_v12  ;;  %v606_v31 = vrot.slane %v605_v34, 2  ;;  %v555_v52 = vmul.f32 %v2483_v46, %v2736_v59  ;;  %v2789_v46 = vld [vmem:[%s3408_s0 + $0xf0] sm:$0xff] }
 0x1c6   :  { %v539_v12 = vmul.f32 %v2416_v17, %v2751_v43  ;;  %3499 = vst [vmem:[#allocation35_spill] sm:$0xff] %v2789_v46  ;;  %v537_v17 = vmul.f32 %v2443_v32, %v2767_v16  ;;  %v540_v32 = vmul.f32 %v2424_v21, %v2789_v46 }
 0x1c7   :  { %v666_v63 = vadd.f32 %v665_v53, %v553_v10  ;;  %v673_v3 = vadd.f32 %v555_v52, %v554_v54  ;;  %v2796_v10 = vld [vmem:[%s3408_s0 + $0x180] sm:$0xff]  ;;  %v658_v53 = vrot.slane %v657_v8, 4  ;;  %v2800_v56 = vadd.f32 %v606_v31, %v605_v34 }
 0x1c8   :  { %v2769_v18 = vpop.permute.xlu1 %466  ;;  %v478_v37 = vpop.permute.xlu0 %477  ;;  %v637_v62 = vadd.f32 %v539_v12, %v538_v15  ;;  %3500 = vst [vmem:[#allocation36_spill] sm:$0xff] %v2796_v10  ;;  %v2805_v12 = vadd.f32 %v613_v47, %v612_v6  ;;  %v621_v54 = vadd.f32 %v620_v19, %v533_v40  ;;  %v2810_v15 = vld [vmem:[%s3408_s0 + $0x188] sm:$0xff]  ;;  %v2818_v31 = vadd.f32 %v581_v7, %v2666_v42  ;;  %v2825_v47 = vld [vmem:[%s3408_s0 + $0x1a0] sm:$0xff] }
 0x1c9   :  { %v674_v58 = vadd.f32 %v673_v3, %v556_v22  ;;  %3501 = vst [vmem:[#allocation37_spill] sm:$0xff] %v2810_v15  ;;  %v667_v34 = vrot.slane %v666_v63, 4  ;;  %v630_v52 = vadd.f32 %v629_v23, %v537_v17  ;;  %v558_v21 = vmul.f32 %v2565_v4, %v2796_v10  ;;  %3503 = vst [vmem:[#allocation39_spill] sm:$0xff] %v2825_v47  ;;  %v2873_v4 = vld [vmem:[%s3408_s0 + $0x1e0] sm:$0xff] }
 0x1ca   :  { %v2827_v22 = vadd.f32 %v599_v1, %v598_v27  ;;  %v650_v40 = vadd.f32 %v649_v28, %v648_v2  ;;  %v659_v19 = vadd.f32 %v658_v53, %v657_v8  ;;  %v2834_v17 = vadd.f32 %v637_v62, %v540_v32  ;;  %v2849_v27 = vld [vmem:[%s3408_s0 + $0x1b0] sm:$0xff]  ;;  %v2857_v62 = vld [vmem:[%s3408_s0 + $0x1c8] sm:$0xff]  ;;  %v2867_v53 = vld [vmem:[%s3408_s0 + $0x198] sm:$0xff]  ;;  %3510 = vst [vmem:[#allocation46_spill] sm:$0xff] %v2873_v4 }
 0x1cb   :  { %v559_v3 = vmul.f32 %v2522_v39, %v2810_v15  ;;  %3506 = vst [vmem:[#allocation42_spill] sm:$0xff] %v2849_v27  ;;  %v615_v8 = vrot.slane %v2805_v12, 2  ;;  %v622_v1 = vrot.slane %v621_v54, 4  ;;  %v562_v39 = vmul.f32 %v2664_v20, %v2825_v47  ;;  %3507 = vst [vmem:[#allocation43_spill] sm:$0xff] %v2857_v62 }
 0x1cc   :  { %v2798_v0 = vpop.permute.xlu1 %500  ;;  %v433_v24 = vpop.permute.xlu0 %432  ;;  %v668_v28 = vadd.f32 %v667_v34, %v666_v63  ;;  %3509 = vst [vmem:[#allocation45_spill] sm:$0xff] %v2867_v53  ;;  %v566_v20 = vmul.f32 %v478_v37, %v2832_v11  ;;  %v651_v63 = vrot.slane %v650_v40, 2  ;;  %v660_v47 = vrot.slane %v659_v19, 2 }
 0x1cd   :  { %v557_v59 = vmul.f32 %v433_v24, %v2784_v5  ;;  %v631_v24 = vrot.slane %v630_v52, 4  ;;  %v682_v23 = vadd.f32 %v559_v3, %v558_v21  ;;  %v564_v5 = vmul.f32 %v2769_v18, %v2849_v27  ;;  %v2884_v21 = vld [vmem:[%s3408_s0 + $0x1e8] sm:$0xff] }
 0x1ce   :  { %v567_v37 = vmul.f32 %v2720_v9, %v2857_v62  ;;  %v2897_v9 = vld [vmem:[%s3408_s0 + $0x1d8] sm:$0xff]  ;;  %v652_v16 = vadd.f32 %v651_v63, %v650_v40 }
 0x1cf   :  { %v675_v6 = vadd.f32 %v674_v58, %v557_v59  ;;  %v2842_v59 = vld [vmem:[%s3408_s0 + $0x1a8] sm:$0xff]  ;;  %v560_v58 = vmul.f32 %v2662_v61, %v2815_v55  ;;  %v2862_v61 = vld [vmem:[%s3408_s0 + $0x1d0] sm:$0xff]  ;;  %v632_v11 = vadd.f32 %v631_v24, %v630_v52 }
 0x1d0   :  { %v486_v42 = vpop.permute.xlu1 %485  ;;  %v497_v7 = vpop.permute.xlu0 %496  ;;  %3505 = vst [vmem:[#allocation41_spill] sm:$0xff] %v2842_v59  ;;  %3508 = vst [vmem:[#allocation44_spill] sm:$0xff] %v2862_v61  ;;  %v563_v34 = vmul.f32 %v2596_v48, %v2842_v59  ;;  %v2890_v48 = vld [vmem:[%s3408_s0 + $0x1f0] sm:$0xff]  ;;  %v700_v62 = vadd.f32 %v567_v37, %v566_v20 }
 0x1d1   :  { %v676_v2 = vrot.slane %v675_v6, 4  ;;  %v683_v55 = vadd.f32 %v682_v23, %v560_v58  ;;  %3511 = vst [vmem:[#allocation47_spill] sm:$0xff] %v2890_v48  ;;  %v570_v23 = vmul.f32 %v497_v7, %v2873_v4 }
 0x1d2   :  { %v691_v3 = vadd.f32 %v563_v34, %v562_v39  ;;  %v571_v34 = vmul.f32 %v2798_v0, %v2884_v21 }
 0x1d3   :  { %v677_v32 = vadd.f32 %v676_v2, %v675_v6  ;;  %v568_v6 = vmul.f32 %v486_v42, %v2862_v61  ;;  %v669_v2 = vrot.slane %v668_v28, 2  ;;  %v2902_v42 = vld [vmem:[%s3408_s0 + $0x1b8] sm:$0xff]  ;;  %v623_v61 = vadd.f32 %v622_v1, %v621_v54 }
 0x1d4   :  { %v505_v46 = vpop.permute.xlu1 %504  ;;  %v452_v43 = vpop.permute.xlu0 %451  ;;  %v692_v39 = vadd.f32 %v691_v3, %v564_v5  ;;  %v709_v1 = vadd.f32 %v571_v34, %v570_v23  ;;  %v2912_v5 = vld [vmem:[%s3408_s0 + $0x1f8] sm:$0xff] }
 0x1d5   :  { %v561_v18 = vmul.f32 %v452_v43, %v2867_v53  ;;  %v678_v58 = vrot.slane %v677_v32, 2  ;;  %v661_v43 = vadd.f32 %v660_v47, %v659_v19  ;;  %v572_v7 = vmul.f32 %v505_v46, %v2890_v48  ;;  %3512 = vst [vmem:[#allocation48_spill] sm:$0xff] %v2912_v5  ;;  %v2918_v19 = vld [vmem:[%s3408_s0 + $0xf8] sm:$0xff] }
 0x1d6   :  { %v701_v53 = vadd.f32 %v700_v62, %v568_v6  ;;  %v670_v54 = vadd.f32 %v669_v2, %v668_v28  ;;  %v616_v46 = vadd.f32 %v615_v8, %v2805_v12  ;;  %v624_v40 = vrot.slane %v623_v61, 2 }
 0x1d7   :  { %v684_v27 = vadd.f32 %v683_v55, %v561_v18  ;;  %v679_v52 = vadd.f32 %v678_v58, %v677_v32  ;;  %v710_v62 = vadd.f32 %v709_v1, %v572_v7 }
 0x1d8   :  { %v490_v4 = vpop.permute.xlu1 %489  ;;  %v471_v59 = vpop.permute.xlu0 %470  ;;  %v671_v12 = vrot.slane %v670_v54, 1  ;;  %v625_v18 = vadd.f32 %v624_v40, %v623_v61  ;;  %v617_v1 = vrot.slane %v616_v46, 1 }
 0x1d9   :  { %v685_v10 = vrot.slane %v684_v27, 4  ;;  %v569_v15 = vmul.f32 %v490_v4, %v2897_v9  ;;  %v565_v57 = vmul.f32 %v471_v59, %v2902_v42  ;;  %v633_v4 = vrot.slane %v632_v11, 2 }
 0x1da   :  { %v662_v59 = vrot.slane %v661_v43, 1  ;;  %v672_v48 = vadd.f32 %v671_v12, %v670_v54 }
 0x1db   :  { %v686_v0 = vadd.f32 %v685_v10, %v684_v27  ;;  %v702_v55 = vadd.f32 %v701_v53, %v569_v15  ;;  %v693_v47 = vadd.f32 %v692_v39, %v565_v57  ;;  %v653_v10 = vrot.slane %v652_v16, 1 }
 0x1dc   :  { %v509_v28 = vpop.permute.xlu1 %508  ;;  %v357_v24 = vpop.permute.xlu0 %356  ;;  %v680_v57 = vrot.slane %v679_v52, 1  ;;  %v634_v3 = vadd.f32 %v633_v4, %v632_v11  ;;  %v663_v2 = vadd.f32 %v662_v59, %v661_v43  ;;  %v738_v59 = vsel %vm737_vm1, %v2686_v25, %v2818_v31 }
 0x1dd   :  { %v687_v20 = vrot.slane %v686_v0, 2  ;;  %v703_v32 = vrot.slane %v702_v55, 4  ;;  %v694_v63 = vrot.slane %v693_v47, 4  ;;  %v573_v37 = vmul.f32 %v509_v28, %v2912_v5 }
 0x1de   :  { %v541_v15 = vmul.f32 %v357_v24, %v2918_v19  ;;  %v654_v28 = vadd.f32 %v653_v10, %v652_v16  ;;  %v681_v5 = vadd.f32 %v680_v57, %v679_v52  ;;  %v3513_v16 = vrot.slane %v2800_v56, 1 }
 0x1df   :  { %v688_v27 = vadd.f32 %v687_v20, %v686_v0  ;;  %v704_v8 = vadd.f32 %v703_v32, %v702_v55  ;;  %v695_v53 = vadd.f32 %v694_v63, %v693_v47  ;;  %v711_v6 = vadd.f32 %v710_v62, %v573_v37 }
 0x1e0   :  { %v639_v58 = vadd.f32 %v2834_v17, %v541_v15  ;;  %v626_v62 = vrot.slane %v625_v18, 1  ;;  %v635_v20 = vrot.slane %v634_v3, 1  ;;  %v751_v43 = vsel %vm737_vm1, %v663_v2, %v654_v28 }
 0x1e1   :  { %v689_v23 = vrot.slane %v688_v27, 1  ;;  %v705_v39 = vrot.slane %v704_v8, 2  ;;  %v696_v34 = vrot.slane %v695_v53, 2  ;;  %v712_v7 = vrot.slane %v711_v6, 4 }
 0x1e2   :  { %v640_v24 = vrot.slane %v639_v58, 4  ;;  %v609_v54 = vadd.f32 %v3513_v16, %v2800_v56  ;;  %v752_v32 = vsel %vm739_vm2, %v672_v48, %v751_v43  ;;  %v618_v63 = vadd.f32 %v617_v1, %v616_v46  ;;  %v2084_v43 = vld [vmem:[%s3409_s5 + $0x68] sm:$0xff]  ;;  %v2079_v16 = vld [vmem:[%s3409_s5 + $0x40] sm:$0xff] }
 0x1e3   :  { %v706_v0 = vadd.f32 %v705_v39, %v704_v8  ;;  %v697_v55 = vadd.f32 %v696_v34, %v695_v53  ;;  %v713_v47 = vadd.f32 %v712_v7, %v711_v6  ;;  %v690_v61 = vadd.f32 %v689_v23, %v688_v27 }
 0x1e4   :  { %v641_v11 = vadd.f32 %v640_v24, %v639_v58  ;;  %v753_v12 = vsel %vm741_vm3, %v681_v5, %v752_v32  ;;  %v627_v57 = vadd.f32 %v626_v62, %v625_v18  ;;  %v636_v31 = vadd.f32 %v635_v20, %v634_v3  ;;  %v2086_v20 = vld [vmem:[%s3409_s5 + $0x78] sm:$0xff]  ;;  %v2076_v32 = vld [vmem:[%s3409_s5 + $0x28] sm:$0xff] }
 0x1e5   :  { %v707_v17 = vrot.slane %v706_v0, 1  ;;  %v698_v40 = vrot.slane %v697_v55, 1  ;;  %v714_v4 = vrot.slane %v713_v47, 2  ;;  %v754_v8 = vsel %vm743_vm4, %v690_v61, %v753_v12  ;;  %2105 = vmatpush1.msra.mxu1 %v2086_v20  ;;  %v2072_v12 = vld [vmem:[%s3409_s5 + $0x8] sm:$0xff] }
 0x1e6   :  { %v642_v52 = vrot.slane %v641_v11, 2  ;;  %v740_v56 = vsel %vm739_vm2, %v2827_v22, %v738_v59  ;;  %v3514_v61 = vmov 0.0   ;;  %v2080_v59 = vld [vmem:[%s3409_s5 + $0x48] sm:$0xff] }
 0x1e7   :  { %v699_v37 = vadd.f32 %v698_v40, %v697_v55  ;;  %v715_v10 = vadd.f32 %v714_v4, %v713_v47  ;;  %v708_v27 = vadd.f32 %v707_v17, %v706_v0  ;;  %v742_v46 = vsel %vm741_vm3, %v609_v54, %v740_v56  ;;  %2106 = vmatprep.subr.mxu1 %v3514_v61  ;;  %v2083_v17 = vld [vmem:[%s3409_s5 + $0x60] sm:$0xff]  ;;  %v2082_v40 = vld [vmem:[%s3409_s5 + $0x58] sm:$0xff]  ;;  %v2081_v4 = vld [vmem:[%s3409_s5 + $0x50] sm:$0xff] }
 0x1e8   :  { %v643_v15 = vadd.f32 %v642_v52, %v641_v11  ;;  %v744_v5 = vsel %vm743_vm4, %v618_v63, %v742_v46  ;;  %v2085_v11 = vld [vmem:[%s3409_s5 + $0x70] sm:$0xff]  ;;  %v2078_v54 = vld [vmem:[%s3409_s5 + $0x38] sm:$0xff]  ;;  %v2075_v63 = vld [vmem:[%s3409_s5 + $0x20] sm:$0xff] }
 0x1e9   :  { %v716_v53 = vrot.slane %v715_v10, 1  ;;  %v755_v25 = vsel %vm745_vm5, %v699_v37, %v754_v8  ;;  %v746_v58 = vsel %vm745_vm5, %v627_v57, %v744_v5  ;;  %2107 = vmatpush1.msra.mxu1 %v2085_v11  ;;  %v2077_v52 = vld [vmem:[%s3409_s5 + $0x30] sm:$0xff]  ;;  %v2074_v37 = vld [vmem:[%s3409_s5 + $0x18] sm:$0xff]  ;;  %v2071_v57 = vld [vmem:[%s3409_s5] sm:$0xff]  ;;  %v2230_v5 = vmov 1966171168  }
 0x1ea   :  { %v644_v48 = vrot.slane %v643_v15, 1  ;;  %v756_v18 = vsel %vm747_vm6, %v708_v27, %v755_v25  ;;  %v748_v23 = vsel %vm747_vm6, %v636_v31, %v746_v58  ;;  %2108 = vmatprep.subr.mxu1 %v3514_v61  ;;  %v2089_v27 = vld [vmem:[%s3409_s5 + $0x90] sm:$0xff]  ;;  %v2088_v8 = vld [vmem:[%s3409_s5 + $0x88] sm:$0xff]  ;;  %v2067_v31 = vld [vmem:[%s3410_s2] sm:$0xff] }
 0x1eb   :  { %v717_v6 = vadd.f32 %v716_v53, %v715_v10  ;;  %2109 = vmatpush1.msra.mxu1 %v2084_v43  ;;  %v2073_v10 = vld [vmem:[%s3409_s5 + $0x10] sm:$0xff]  ;;  %v2087_v53 = vld [vmem:[%s3409_s5 + $0x80] sm:$0xff]  ;;  %v2068_v25 = vld [vmem:[%s3410_s2 + $0x8] sm:$0xff] }
 0x1ec   :  { %v645_v2 = vadd.f32 %v644_v48, %v643_v15  ;;  %2110 = vmatprep.subr.mxu1 %v3514_v61  ;;  %v2090_v15 = vld [vmem:[%s3409_s5 + $0x98] sm:$0xff]  ;;  %2207 = vmatprep.mubr.msk.f32.mxu1 %vm124_vm0, %v2068_v25  ;;  %v2069_v48 = vld [vmem:[%s3410_s2 + $0x10] sm:$0xff] }
 0x1ed   :  { %v757_v3 = vsel %vm749_vm7, %v717_v6, %v756_v18  ;;  %2111 = vmatpush1.msra.mxu1 %v2083_v17  ;;  %v2070_v56 = vld [vmem:[%s3410_s2 + $0x18] sm:$0xff]  ;;  %v792_v18 = vunpack.c.l.s4 %v2230_v5 }
 0x1ee   :  { %v761_v22 = vsel %vm720_vm8, %v757_v3, -1e+30  ;;  %v750_v39 = vsel %vm749_vm7, %v645_v2, %v748_v23  ;;  %2112 = vmatprep.subr.mxu1 %v3514_v61 }
 0x1ef   :  { %764 = vmax.xlane.f32.xlu1 %v761_v22  ;;  %v760_v34 = vsel %vm720_vm8, %v750_v39, -1e+30  ;;  %2113 = vmatpush1.msra.mxu1 %v2082_v40  ;;  %v793_v58 = vunpack.c.0.s8 %v792_v18 }
 0x1f0   :  { %762 = vmax.xlane.f32.xlu0 %v760_v34  ;;  %2114 = vmatprep.subr.mxu1 %v3514_v61 }
 0x1f1   :  { %2115 = vmatpush1.msra.mxu1 %v2081_v4  ;;  %v3044_v39 = vsub.s32 %v793_v58, %v2379_v26 }
 0x1f2   :  { %2116 = vmatprep.subr.mxu1 %v3514_v61 }
 0x1f3   :  { %2117 = vmatpush1.msra.mxu1 %v2080_v59 }
 0x1f4   :  { %2118 = vmatprep.subr.mxu1 %v3514_v61 }
 0x1f5   :  { %2119 = vmatpush1.msra.mxu1 %v2079_v16 }
 0x1f6   :  { %2120 = vmatprep.subr.mxu1 %v3514_v61 }
 0x1f7   :  { %2121 = vmatpush1.msra.mxu1 %v2078_v54 }
 0x1f8   :  { %2122 = vmatprep.subr.mxu1 %v3514_v61 }
 0x1f9   :  { %2123 = vmatpush1.msra.mxu1 %v2077_v52 }
 0x1fa   :  { %2124 = vmatprep.subr.mxu1 %v3514_v61 }
 0x1fb   :  { %2125 = vmatpush1.msra.mxu1 %v2076_v32 }
 0x1fc   :  { %2126 = vmatprep.subr.mxu1 %v3514_v61 }
 0x1fd   :  { %2127 = vmatpush1.msra.mxu1 %v2075_v63 }
 0x1fe   :  { %2128 = vmatprep.subr.mxu1 %v3514_v61 }
 0x1ff   :  { %2129 = vmatpush1.msra.mxu1 %v2074_v37 }
 0x200   :  { %2130 = vmatprep.subr.mxu1 %v3514_v61 }
 0x201   :  { %2131 = vmatpush1.msra.mxu1 %v2073_v10  ;;  %v3515_v10 = vld [vmem:[#allocation2_spill] sm:$0xff] }
 0x202   :  { %2132 = vmatprep.subr.mxu1 %v3514_v61 }
 0x203   :  { %2133 = vmatpush1.msra.mxu1 %v2072_v12 }
 0x204   :  { %2134 = vmatprep.subr.mxu1 %v3514_v61 }
 0x205   :  { %2135 = vmatpush1.msra.mxu1 %v2071_v57 }
 0x206   :  { %2160 = vmatprep.subr.mxu1 %v3514_v61 }
 0x207   :  { %2161 = vmatpush2.msra.mxu1 %v2090_v15  ;;  %v3516_v15 = vld [vmem:[#allocation3_spill] sm:$0xff] }
 0x208   :  { %2162 = vmatprep.subr.mxu1 %v3514_v61 }
 0x209   :  { %2163 = vmatpush2.msra.mxu1 %v2089_v27 }
 0x20a   :  { %2164 = vmatprep.subr.mxu1 %v3514_v61 }
 0x20b   :  { %2165 = vmatpush2.msra.mxu1 %v2088_v8  ;;  %v3517_v8 = vld [vmem:[#allocation4_spill] sm:$0xff] }
 0x20c   :  { %2166 = vmatprep.subr.mxu1 %v3514_v61 }
 0x20d   :  { %2167 = vmatpush2.msra.mxu1 %v2087_v53 }
 0x20e   :  { %2169 = vmatmul.mubr.f32.vlgmr.msra.gmra.mxu1 %v2067_v31  ;;  %v3519_v31 = vld [vmem:[#allocation5_spill] sm:$0xff] }
 0x20f   :  { %2208 = vmatprep.mubr.msk.f32.mxu1 %vm124_vm0, %v2070_v56 }
 0x212   :  { %2174 = vmatmul.mubr.f32.gmra.mxu1 %v2069_v48  ;;  %v3520_v48 = vld [vmem:[#allocation11_spill] sm:$0xff] }
 0x278   :  { %v765_v7 = vpop.xlane.xlu1 %764 }
 0x279   :  { %v763_v1 = vpop.xlane.xlu0 %762  ;;  %v767_v28 = vsub.f32 %v761_v22, %v765_v7 }
 0x27a   :  { %v766_v24 = vsub.f32 %v760_v34, %v763_v1 }
 0x27b   :  { %v770_v55 = vmul.f32 1.442695, %v767_v28 }
 0x27c   :  { %v768_v0 = vmul.f32 1.442695, %v766_v24 }
 0x27e   :  { %2217 = vpow2.f32 %v768_v0 }
 0x27f   :  { %2219 = vpow2.f32 %v770_v55 }
 0x28b   :  { %v2944_v47 = vpop.eup %2217 }
 0x28c   :  { %772 = vadd.xlane.f32.xlu0 %v2944_v47  ;;  %v2947_v62 = vpop.eup %2219 }
 0x290   :  { %774 = vadd.xlane.f32.xlu0 %v2947_v62 }
 0x315   :  { %v773_v46 = vpop.xlane.xlu0 %772 }
 0x316   :  { %2221 = vrcp.f32 %v773_v46 }
 0x319   :  { %v775_v6 = vpop.xlane.xlu0 %774 }
 0x31a   :  { %2223 = vrcp.f32 %v775_v6 }
 0x323   :  { %v2222_v2 = vpop.eup %2221 }
 0x324   :  { %v778_v3 = vmul.f32 %v2222_v2, %v773_v46 }
 0x326   :  { %v780_v23 = vsub.f32 2.0, %v778_v3  ;;  %v3522_v3 = vld [vmem:[#allocation13_spill] sm:$0xff] }
 0x327   :  { %v2224_v22 = vpop.eup %2223 }
 0x328   :  { %v782_v34 = vmul.f32 %v2222_v2, %v780_v23  ;;  %v779_v7 = vmul.f32 %v2224_v22, %v775_v6  ;;  %v3521_v6 = vld [vmem:[#allocation12_spill] sm:$0xff] }
 0x32a   :  { %v784_v1 = vmul.f32 %v2944_v47, %v782_v34  ;;  %v781_v28 = vsub.f32 2.0, %v779_v7  ;;  %v3523_v34 = vld [vmem:[#allocation7_spill] sm:$0xff] }
 0x32c   :  { %786 = vst [vmem:[%s3411_s7] sm:$0xff] %v784_v1  ;;  %v797_v24 = vrot.slane %v784_v1, %v3044_v39  ;;  %v783_v0 = vmul.f32 %v2224_v22, %v781_v28 }
 0x32e   :  { %v805_v55 = vcombine.high %v797_v24, %v797_v24  ;;  %v785_v20 = vmul.f32 %v2947_v62, %v783_v0  ;;  %v813_v61 = vrot.slane %v797_v24, %v3044_v39  ;;  %v3525_v0 = vld [vmem:[#allocation10_spill] sm:$0xff] }
 0x330   :  { %787 = vst [vmem:[%s3411_s7 + $0x8] sm:$0xff] %v785_v20  ;;  %v839_v11 = vcombine.high %v785_v20, %v785_v20  ;;  %v891_v47 = vrot.slane %v813_v61, %v2386_v29  ;;  %v827_v4 = vrot.slane %v805_v55, %v3044_v39  ;;  %v835_v37 = vcombine.high %v813_v61, %v813_v61  ;;  %v3526_v61 = vld [vmem:[#allocation9_spill] sm:$0xff] }
 0x331   :  { %v846_v2 = vrot.slane %v785_v20, %v3044_v39 }
 0x332   :  { %v853_v43 = vrot.slane %v839_v11, %v3044_v39  ;;  %v969_v17 = vmul.f32 %v891_v47, %v2470_v41  ;;  %v968_v40 = vmul.f32 %v891_v47, %v2476_v44  ;;  %v971_v59 = vmul.f32 %v891_v47, %v2491_v50 }
 0x333   :  { %v970_v16 = vmul.f32 %v891_v47, %v2481_v45  ;;  %v895_v54 = vrot.slane %v827_v4, %v2386_v29  ;;  %v790_v44 = vcombine.high %v784_v1, %v784_v1  ;;  %v899_v57 = vrot.slane %v835_v37, %v2386_v29  ;;  %v3524_v1 = vld [vmem:[#allocation8_spill] sm:$0xff] }
 0x334   :  { %1034 = vadd.xlane.f32.xlu0 %v969_v17  ;;  %1032 = vadd.xlane.f32.xlu1 %v968_v40  ;;  %v855_v62 = vcombine.high %v853_v43, %v853_v43  ;;  %v3065_v52 = vrot.slane %v853_v43, %v3044_v39  ;;  %v837_v18 = vcombine.high %v827_v4, %v827_v4  ;;  %v3527_v47 = vld [vmem:[#allocation16_spill] sm:$0xff]  ;;  %v3528_v17 = vld [vmem:[#allocation18_spill] sm:$0xff] }
 0x335   :  { %v973_v32 = vmul.f32 %v895_v54, %v2439_v30  ;;  %v972_v63 = vmul.f32 %v895_v54, %v2448_v33  ;;  %v804_v45 = vrot.slane %v790_v44, %v3044_v39  ;;  %v975_v50 = vmul.f32 %v895_v54, %v2459_v36  ;;  %v3518_v33 = vld [vmem:[#allocation6_spill] sm:$0xff]  ;;  %v3530_v44 = vld [vmem:[#allocation15_spill] sm:$0xff] }
 0x336   :  { %v3068_v41 = vrot.slane %v855_v62, %v3044_v39  ;;  %v974_v12 = vmul.f32 %v895_v54, %v3515_v10  ;;  %v977_v27 = vmul.f32 %v899_v57, %v3516_v15  ;;  %v976_v53 = vmul.f32 %v899_v57, %v3517_v8  ;;  %v3532_v15 = vld [vmem:[#allocation23_spill] sm:$0xff] }
 0x337   :  { %v820_v30 = vrot.slane %v804_v45, %v3044_v39  ;;  %v979_v25 = vmul.f32 %v899_v57, %v3518_v33  ;;  %v978_v56 = vmul.f32 %v899_v57, %v3519_v31  ;;  %v903_v22 = vrot.slane %v837_v18, %v2386_v29  ;;  %v3539_v18 = vld [vmem:[#allocation19_spill] sm:$0xff] }
 0x338   :  { %1038 = vadd.xlane.f32.xlu0 %v971_v59  ;;  %1036 = vadd.xlane.f32.xlu1 %v970_v16  ;;  %v862_v24 = vrot.slane %v846_v2, %v3044_v39  ;;  %v806_v11 = vcombine.high %v804_v45, %v804_v45  ;;  %v3529_v59 = vld [vmem:[#allocation22_spill] sm:$0xff] }
 0x339   :  { %v907_v36 = vrot.slane %v820_v30, %v2386_v29  ;;  %v981_v7 = vmul.f32 %v903_v22, %v3523_v34  ;;  %v980_v28 = vmul.f32 %v903_v22, %v3524_v1  ;;  %v983_v55 = vmul.f32 %v903_v22, %v3525_v0  ;;  %v3542_v1 = vld [vmem:[#allocation37_spill] sm:$0xff] }
 0x33a   :  { %v982_v20 = vmul.f32 %v903_v22, %v3526_v61  ;;  %v834_v4 = vrot.slane %v806_v11, %v3044_v39  ;;  %v836_v45 = vcombine.high %v820_v30, %v820_v30  ;;  %v3533_v30 = vld [vmem:[#allocation33_spill] sm:$0xff]  ;;  %v939_v34 = vrot.slane %v3065_v52, %v2386_v29 }
 0x33b   :  { %v985_v46 = vmul.f32 %v907_v36, %v3520_v48  ;;  %v984_v5 = vmul.f32 %v907_v36, %v3521_v6  ;;  %v987_v58 = vmul.f32 %v907_v36, %v2625_v51  ;;  %v986_v23 = vmul.f32 %v907_v36, %v3522_v3 }
 0x33c   :  { %1042 = vadd.xlane.f32.xlu0 %v973_v32  ;;  %1040 = vadd.xlane.f32.xlu1 %v972_v63  ;;  %v923_v51 = vrot.slane %v862_v24, %v2386_v29  ;;  %v911_v54 = vrot.slane %v834_v4, %v2386_v29  ;;  %v3531_v63 = vld [vmem:[#allocation20_spill] sm:$0xff] }
 0x33e   :  { %v1001_v43 = vmul.f32 %v923_v51, %v3527_v47  ;;  %v1000_v40 = vmul.f32 %v923_v51, %v3528_v17  ;;  %v1003_v62 = vmul.f32 %v923_v51, %v2675_v38  ;;  %v1002_v16 = vmul.f32 %v923_v51, %v3529_v59  ;;  %v3546_v47 = vld [vmem:[#allocation29_spill] sm:$0xff]  ;;  %v3547_v17 = vld [vmem:[#allocation32_spill] sm:$0xff] }
 0x33f   :  { %v988_v32 = vmul.f32 %v911_v54, %v3530_v44  ;;  %v989_v37 = vmul.f32 %v911_v54, %v3531_v63  ;;  %v990_v10 = vmul.f32 %v911_v54, %v2705_v35  ;;  %v915_v38 = vrot.slane %v836_v45, %v2386_v29  ;;  %v3549_v44 = vld [vmem:[#allocation30_spill] sm:$0xff]  ;;  %v3550_v63 = vld [vmem:[#allocation28_spill] sm:$0xff] }
 0x340   :  { %1046 = vadd.xlane.f32.xlu0 %v975_v50  ;;  %1044 = vadd.xlane.f32.xlu1 %v974_v12  ;;  %v854_v50 = vcombine.high %v846_v2, %v846_v2  ;;  %v991_v12 = vmul.f32 %v911_v54, %v2758_v14  ;;  %v884_v14 = vcombine.high %v862_v24, %v862_v24  ;;  %v3543_v24 = vld [vmem:[#allocation36_spill] sm:$0xff]  ;;  %v3551_v45 = vld [vmem:[#allocation34_spill] sm:$0xff] }
 0x341   :  { %v992_v57 = vmul.f32 %v915_v38, %v2710_v13  ;;  %v995_v33 = vmul.f32 %v915_v38, %v3533_v30  ;;  %v3536_v13 = vld [vmem:[#allocation25_spill] sm:$0xff]  ;;  %v1016_v0 = vmul.f32 %v939_v34, %v3543_v24  ;;  %v3555_v30 = vld [vmem:[#allocation42_spill] sm:$0xff] }
 0x342   :  { %v876_v8 = vrot.slane %v854_v50, %v3044_v39  ;;  %v3537_v39 = vld [vmem:[#allocation24_spill] sm:$0xff]  ;;  %v931_v6 = vrot.slane %v884_v14, %v2386_v29  ;;  %v3556_v14 = vld [vmem:[#allocation43_spill] sm:$0xff] }
 0x344   :  { %1050 = vadd.xlane.f32.xlu0 %v977_v27  ;;  %1048 = vadd.xlane.f32.xlu1 %v976_v53  ;;  %v993_v27 = vmul.f32 %v915_v38, %v3532_v15  ;;  %v994_v53 = vmul.f32 %v915_v38, %v2731_v49  ;;  %v927_v35 = vrot.slane %v876_v8, %v2386_v29  ;;  %v3538_v49 = vld [vmem:[#allocation21_spill] sm:$0xff]  ;;  %v3554_v15 = vld [vmem:[#allocation39_spill] sm:$0xff] }
 0x345   :  { %v1008_v2 = vmul.f32 %v931_v6, %v3539_v18  ;;  %v943_v38 = vrot.slane %v3068_v41, %v2386_v29  ;;  %v3561_v18 = vld [vmem:[#allocation47_spill] sm:$0xff] }
 0x346   :  { %v1007_v48 = vmul.f32 %v927_v35, %v3536_v13  ;;  %v3558_v13 = vld [vmem:[#allocation44_spill] sm:$0xff] }
 0x348   :  { %1054 = vadd.xlane.f32.xlu0 %v979_v25  ;;  %1052 = vadd.xlane.f32.xlu1 %v978_v56  ;;  %v3534_v25 = vld [vmem:[#allocation17_spill] sm:$0xff]  ;;  %v3535_v56 = vld [vmem:[#allocation14_spill] sm:$0xff] }
 0x349   :  { %v1005_v31 = vmul.f32 %v927_v35, %v3534_v25  ;;  %v1004_v36 = vmul.f32 %v927_v35, %v3535_v56 }
 0x34c   :  { %1066 = vadd.xlane.f32.xlu0 %v985_v46  ;;  %1064 = vadd.xlane.f32.xlu1 %v984_v5  ;;  %v1006_v46 = vmul.f32 %v927_v35, %v3537_v39  ;;  %v1009_v5 = vmul.f32 %v931_v6, %v3538_v49  ;;  %v3560_v49 = vld [vmem:[#allocation48_spill] sm:$0xff] }
 0x350   :  { %1070 = vadd.xlane.f32.xlu0 %v987_v58  ;;  %1068 = vadd.xlane.f32.xlu1 %v986_v23  ;;  %v3540_v58 = vld [vmem:[#allocation27_spill] sm:$0xff]  ;;  %v3541_v23 = vld [vmem:[#allocation26_spill] sm:$0xff] }
 0x351   :  { %v1011_v3 = vmul.f32 %v931_v6, %v3540_v58  ;;  %v1010_v22 = vmul.f32 %v931_v6, %v3541_v23  ;;  %v2232_v58 = vmov 1985246804   ;;  %v2170_v23 = vpop.f32.mrf.mxu1 }
 0x354   :  { %1058 = vadd.xlane.f32.xlu0 %v981_v7  ;;  %1056 = vadd.xlane.f32.xlu1 %v980_v28  ;;  %v838_v7 = vcombine.high %v834_v4, %v834_v4  ;;  %v1017_v28 = vmul.f32 %v939_v34, %v3542_v1  ;;  %v3548_v4 = vld [vmem:[#allocation35_spill] sm:$0xff] }
 0x356   :  { %v919_v11 = vrot.slane %v838_v7, %v2386_v29  ;;  %v2172_v7 = vpop.f32.mrf.mxu1 }
 0x358   :  { %1062 = vadd.xlane.f32.xlu0 %v983_v55  ;;  %1060 = vadd.xlane.f32.xlu1 %v982_v20  ;;  %v3544_v55 = vld [vmem:[#allocation38_spill] sm:$0xff]  ;;  %v3545_v20 = vld [vmem:[#allocation45_spill] sm:$0xff]  ;;  %v998_v59 = vmul.f32 %v919_v11, %v3548_v4  ;;  %v2175_v24 = vpop.f32.mrf.mxu1 }
 0x359   :  { %v1018_v61 = vmul.f32 %v939_v34, %v3544_v55  ;;  %v1019_v51 = vmul.f32 %v939_v34, %v3545_v20  ;;  %v1740_v55 = vadd.s32 4294967288, %v2630_v60 }
 0x35b   :  { %v3175_v4 = vsub.s32 %v1740_v55, %v2379_v26 }
 0x35c   :  { %1098 = vadd.xlane.f32.xlu1 %v1001_v43  ;;  %1096 = vadd.xlane.f32.xlu0 %v1000_v40  ;;  %v996_v43 = vmul.f32 %v919_v11, %v3546_v47  ;;  %v997_v40 = vmul.f32 %v919_v11, %v3547_v17  ;;  %v1747_v17 = vadd.s32 4294967280, %v2630_v60 }
 0x360   :  { %1102 = vadd.xlane.f32.xlu1 %v1003_v62  ;;  %1100 = vadd.xlane.f32.xlu0 %v1002_v16  ;;  %v886_v62 = vcombine.high %v876_v8, %v876_v8  ;;  %v999_v16 = vmul.f32 %v919_v11, %v2918_v19  ;;  %v3553_v19 = vld [vmem:[#allocation41_spill] sm:$0xff]  ;;  %v885_v8 = vcombine.high %v3065_v52, %v3065_v52  ;;  %v2177_v11 = vpop.f32.mrf.mxu1 }
 0x362   :  { %v935_v54 = vrot.slane %v886_v62, %v2386_v29  ;;  %v947_v35 = vrot.slane %v885_v8, %v2386_v29  ;;  %v3172_v62 = vsub.s32 %v2630_v60, %v2379_v26 }
 0x364   :  { %1072 = vadd.xlane.f32.xlu1 %v988_v32  ;;  %1074 = vadd.xlane.f32.xlu0 %v989_v37  ;;  %v1013_v32 = vmul.f32 %v935_v54, %v3549_v44  ;;  %v1012_v37 = vmul.f32 %v935_v54, %v3550_v63  ;;  %v1015_v50 = vmul.f32 %v935_v54, %v3551_v45 }
 0x365   :  { %v1025_v25 = vmul.f32 %v947_v35, %v3556_v14  ;;  %v1027_v52 = vmul.f32 %v947_v35, %v2897_v9  ;;  %v3178_v63 = vsub.s32 %v1747_v17, %v2379_v26 }
 0x368   :  { %1076 = vadd.xlane.f32.xlu1 %v990_v10  ;;  %1078 = vadd.xlane.f32.xlu0 %v991_v12  ;;  %v3552_v10 = vld [vmem:[#allocation31_spill] sm:$0xff] }
 0x369   :  { %v1014_v12 = vmul.f32 %v935_v54, %v3552_v10 }
 0x36c   :  { %1080 = vadd.xlane.f32.xlu1 %v992_v57  ;;  %1082 = vadd.xlane.f32.xlu0 %v993_v27  ;;  %v1021_v57 = vmul.f32 %v943_v38, %v3553_v19  ;;  %v1020_v27 = vmul.f32 %v943_v38, %v3554_v15 }
 0x370   :  { %1084 = vadd.xlane.f32.xlu1 %v994_v53  ;;  %1086 = vadd.xlane.f32.xlu0 %v995_v33  ;;  %v1023_v53 = vmul.f32 %v943_v38, %v2902_v42  ;;  %v1022_v33 = vmul.f32 %v943_v38, %v3555_v30 }
 0x374   :  { %1106 = vadd.xlane.f32.xlu1 %v1005_v31  ;;  %1104 = vadd.xlane.f32.xlu0 %v1004_v36  ;;  %v3557_v31 = vld [vmem:[#allocation40_spill] sm:$0xff]  ;;  %v887_v36 = vcombine.high %v3068_v41, %v3068_v41 }
 0x375   :  { %v1024_v56 = vmul.f32 %v947_v35, %v3557_v31 }
 0x376   :  { %v951_v42 = vrot.slane %v887_v36, %v2386_v29  ;;  %v2206_v29 = vld [vmem:[%s3412_s6] ss:$0 sm:$0xff] }
 0x377   :  { %v2171_v34 = vadd.f32 %v2206_v29, %v2170_v23  ;;  %v2176_v20 = vadd.f32 %v2206_v29, %v2175_v24 }
 0x378   :  { %1110 = vadd.xlane.f32.xlu1 %v1007_v48  ;;  %1108 = vadd.xlane.f32.xlu0 %v1006_v46  ;;  %v1026_v48 = vmul.f32 %v947_v35, %v3558_v13  ;;  %v1029_v39 = vmul.f32 %v951_v42, %v2884_v21  ;;  %v3559_v46 = vld [vmem:[#allocation46_spill] sm:$0xff]  ;;  %v1030_v41 = vmul.f32 %v951_v42, %v3561_v18 }
 0x379   :  { %v1028_v6 = vmul.f32 %v951_v42, %v3559_v46  ;;  %2225 = vtanh.f32 %v2171_v34 }
 0x37a   :  { %2227 = vtanh.f32 %v2176_v20 }
 0x37c   :  { %1114 = vadd.xlane.f32.xlu1 %v1009_v5  ;;  %1112 = vadd.xlane.f32.xlu0 %v1008_v2  ;;  %v1031_v5 = vmul.f32 %v951_v42, %v3560_v49  ;;  %v2231_v2 = vmov 839922192  }
 0x37d   :  { %v1225_v9 = vunpack.c.l.s4 %v2231_v2 }
 0x37f   :  { %v1226_v21 = vunpack.c.0.s8 %v1225_v9 }
 0x380   :  { %1118 = vadd.xlane.f32.xlu1 %v1011_v3  ;;  %1116 = vadd.xlane.f32.xlu0 %v1010_v22  ;;  %v1232_v3 = vunpack.c.l.s4 %v2232_v58 }
 0x381   :  { %v3160_v1 = vsub.s32 %v1226_v21, %v2379_v26 }
 0x382   :  { %v1233_v22 = vunpack.c.0.s8 %v1232_v3 }
 0x384   :  { %1130 = vadd.xlane.f32.xlu1 %v1017_v28  ;;  %1128 = vadd.xlane.f32.xlu0 %v1016_v0  ;;  %v3163_v28 = vsub.s32 %v1233_v22, %v2379_v26 }
 0x388   :  { %1132 = vadd.xlane.f32.xlu1 %v1018_v61  ;;  %1134 = vadd.xlane.f32.xlu0 %v1019_v51 }
 0x38c   :  { %1088 = vadd.xlane.f32.xlu1 %v996_v43  ;;  %1090 = vadd.xlane.f32.xlu0 %v997_v40  ;;  %v1754_v40 = vadd.s32 4294967272, %v2630_v60 }
 0x390   :  { %1092 = vadd.xlane.f32.xlu1 %v998_v59  ;;  %1094 = vadd.xlane.f32.xlu0 %v999_v16 }
 0x394   :  { %1122 = vadd.xlane.f32.xlu1 %v1013_v32  ;;  %1120 = vadd.xlane.f32.xlu0 %v1012_v37  ;;  %v3181_v37 = vsub.s32 %v1754_v40, %v2379_v26 }
 0x398   :  { %1126 = vadd.xlane.f32.xlu1 %v1015_v50  ;;  %1124 = vadd.xlane.f32.xlu0 %v1014_v12 }
 0x39c   :  { %1138 = vadd.xlane.f32.xlu0 %v1021_v57  ;;  %1136 = vadd.xlane.f32.xlu1 %v1020_v27  ;;  %v2226_v27 = vpop.eup %2225 }
 0x3a0   :  { %1142 = vadd.xlane.f32.xlu0 %v1023_v53  ;;  %1140 = vadd.xlane.f32.xlu1 %v1022_v33 }
 0x3a4   :  { %1146 = vadd.xlane.f32.xlu0 %v1025_v25  ;;  %1144 = vadd.xlane.f32.xlu1 %v1024_v56  ;;  %v2211_v25 = vpack.c.bf16 %v2226_v27, %v2226_v27 }
 0x3a6   :  { %2189 = vst.msk [vmem:[%s3413_s8] sm:$0xf] %vm2064_vm12, %v2211_v25 }
 0x3a8   :  { %1150 = vadd.xlane.f32.xlu0 %v1027_v52  ;;  %1148 = vadd.xlane.f32.xlu1 %v1026_v48  ;;  %v2228_v48 = vpop.eup %2227 }
 0x3a9   :  { %v2212_v18 = vpack.c.bf16 %v2228_v48, %v2228_v48 }
 0x3ab   :  { %2190 = vst.msk [vmem:[%s3413_s8 + $0x4] sm:$0xf] %vm2064_vm12, %v2212_v18 }
 0x3ac   :  { %1154 = vadd.xlane.f32.xlu0 %v1029_v39  ;;  %1152 = vadd.xlane.f32.xlu1 %v1028_v6 }
 0x3b0   :  { %1158 = vadd.xlane.f32.xlu0 %v1031_v5  ;;  %1156 = vadd.xlane.f32.xlu1 %v1030_v41 }
 0x3bd   :  { %v1033_v0 = vpop.xlane.xlu1 %1032  ;;  %v1035_v61 = vpop.xlane.xlu0 %1034 }
 0x3be   :  { %v1160_v51 = vpack.c.bf16 %v1035_v61, %v1033_v0 }
 0x3c0   :  { %v1230_v47 = vrot.slane %v1160_v51, %v3160_v1  ;;  %v1237_v43 = vrot.slane %v1160_v51, %v3163_v28 }
 0x3c1   :  { %v1037_v59 = vpop.xlane.xlu1 %1036  ;;  %v1039_v16 = vpop.xlane.xlu0 %1038 }
 0x3c2   :  { %v1672_v54 = vunpack.c.l.b16 %v1230_v47  ;;  %v1673_v44 = vunpack.c.l.b16 %v1237_v43  ;;  %v1161_v32 = vpack.c.bf16 %v1039_v16, %v1037_v59 }
 0x3c4   :  { %v1244_v45 = vrot.slane %v1161_v32, %v3160_v1  ;;  %v1251_v50 = vrot.slane %v1161_v32, %v3163_v28  ;;  %v1739_v60 = vrot.slane %v1672_v54, %v3172_v62  ;;  %v1744_v10 = vrot.slane %v1673_v44, %v3175_v4 }
 0x3c5   :  { %v1041_v12 = vpop.xlane.xlu1 %1040  ;;  %v1043_v38 = vpop.xlane.xlu0 %1042 }
 0x3c6   :  { %v1674_v19 = vunpack.c.l.b16 %v1244_v45  ;;  %v1675_v57 = vunpack.c.l.b16 %v1251_v50  ;;  %v1162_v15 = vpack.c.bf16 %v1043_v38, %v1041_v12  ;;  %v1746_v33 = vsel %vm1745_vm9, %v1744_v10, %v1739_v60 }
 0x3c8   :  { %v1751_v26 = vrot.slane %v1674_v19, %v3178_v63  ;;  %v1758_v8 = vrot.slane %v1675_v57, %v3181_v37  ;;  %v1258_v53 = vrot.slane %v1162_v15, %v3160_v1  ;;  %v1265_v30 = vrot.slane %v1162_v15, %v3163_v28 }
 0x3c9   :  { %v1045_v35 = vpop.xlane.xlu1 %1044  ;;  %v1047_v14 = vpop.xlane.xlu0 %1046 }
 0x3ca   :  { %v1753_v31 = vsel %vm1752_vm10, %v1751_v26, %v1746_v33  ;;  %v1676_v56 = vunpack.c.l.b16 %v1258_v53  ;;  %v1677_v36 = vunpack.c.l.b16 %v1265_v30  ;;  %v1163_v52 = vpack.c.bf16 %v1047_v14, %v1045_v35 }
 0x3cb   :  { %v1760_v13 = vsel %vm1759_vm11, %v1758_v8, %v1753_v31 }
 0x3cc   :  { %v1272_v42 = vrot.slane %v1163_v52, %v3160_v1  ;;  %v1279_v39 = vrot.slane %v1163_v52, %v3163_v28  ;;  %v1764_v46 = vrot.slane %v1676_v56, %v3172_v62  ;;  %v1768_v6 = vrot.slane %v1677_v36, %v3175_v4 }
 0x3cd   :  { %v1049_v49 = vpop.xlane.xlu1 %1048  ;;  %v1051_v5 = vpop.xlane.xlu0 %1050 }
 0x3ce   :  { %v1678_v41 = vunpack.c.l.b16 %v1272_v42  ;;  %v1679_v2 = vunpack.c.l.b16 %v1279_v39  ;;  %v1164_v9 = vpack.c.bf16 %v1051_v5, %v1049_v49  ;;  %v1769_v21 = vsel %vm1745_vm9, %v1768_v6, %v1764_v46 }
 0x3d0   :  { %v1773_v58 = vrot.slane %v1678_v41, %v3178_v63  ;;  %v1778_v3 = vrot.slane %v1679_v2, %v3181_v37  ;;  %v1286_v23 = vrot.slane %v1164_v9, %v3160_v1  ;;  %v1293_v29 = vrot.slane %v1164_v9, %v3163_v28 }
 0x3d1   :  { %v1053_v22 = vpop.xlane.xlu1 %1052  ;;  %v1055_v34 = vpop.xlane.xlu0 %1054 }
 0x3d2   :  { %v1774_v7 = vsel %vm1752_vm10, %v1773_v58, %v1769_v21  ;;  %v1680_v24 = vunpack.c.l.b16 %v1286_v23  ;;  %v1681_v0 = vunpack.c.l.b16 %v1293_v29  ;;  %v1165_v55 = vpack.c.bf16 %v1055_v34, %v1053_v22 }
 0x3d3   :  { %v1779_v61 = vsel %vm1759_vm11, %v1778_v3, %v1774_v7 }
 0x3d4   :  { %v2046_v20 = vsel %vm737_vm1, %v1779_v61, %v1760_v13  ;;  %v1300_v51 = vrot.slane %v1165_v55, %v3160_v1  ;;  %v1783_v11 = vrot.slane %v1680_v24, %v3172_v62  ;;  %v1787_v47 = vrot.slane %v1681_v0, %v3175_v4 }
 0x3d5   :  { %v1307_v43 = vrot.slane %v1165_v55, %v3163_v28  ;;  %v1065_v17 = vpop.xlane.xlu1 %1064  ;;  %v1067_v40 = vpop.xlane.xlu0 %1066 }
 0x3d6   :  { %v1682_v59 = vunpack.c.l.b16 %v1300_v51  ;;  %v1168_v16 = vpack.c.bf16 %v1067_v40, %v1065_v17  ;;  %v1788_v32 = vsel %vm1745_vm9, %v1787_v47, %v1783_v11 }
 0x3d7   :  { %v1683_v54 = vunpack.c.l.b16 %v1307_v43 }
 0x3d8   :  { %v1792_v44 = vrot.slane %v1682_v59, %v3178_v63  ;;  %v1342_v19 = vrot.slane %v1168_v16, %v3160_v1  ;;  %v1349_v57 = vrot.slane %v1168_v16, %v3163_v28 }
 0x3d9   :  { %v1797_v45 = vrot.slane %v1683_v54, %v3181_v37  ;;  %v1069_v50 = vpop.xlane.xlu1 %1068  ;;  %v1071_v60 = vpop.xlane.xlu0 %1070 }
 0x3da   :  { %v1793_v10 = vsel %vm1752_vm10, %v1792_v44, %v1788_v32  ;;  %v1169_v12 = vpack.c.bf16 %v1071_v60, %v1069_v50  ;;  %v1688_v30 = vunpack.c.l.b16 %v1342_v19  ;;  %v1689_v33 = vunpack.c.l.b16 %v1349_v57 }
 0x3db   :  { %v1798_v38 = vsel %vm1759_vm11, %v1797_v45, %v1793_v10 }
 0x3dc   :  { %v2047_v15 = vsel %vm739_vm2, %v1798_v38, %v2046_v20  ;;  %v1356_v27 = vrot.slane %v1169_v12, %v3160_v1  ;;  %v1363_v35 = vrot.slane %v1169_v12, %v3163_v28  ;;  %v1821_v42 = vrot.slane %v1688_v30, %v3172_v62 }
 0x3dd   :  { %v1057_v26 = vpop.xlane.xlu1 %1056  ;;  %v1059_v8 = vpop.xlane.xlu0 %1058  ;;  %v1825_v39 = vrot.slane %v1689_v33, %v3175_v4 }
 0x3de   :  { %v1166_v53 = vpack.c.bf16 %v1059_v8, %v1057_v26  ;;  %v1690_v31 = vunpack.c.l.b16 %v1356_v27  ;;  %v1691_v46 = vunpack.c.l.b16 %v1363_v35 }
 0x3df   :  { %v1826_v29 = vsel %vm1745_vm9, %v1825_v39, %v1821_v42 }
 0x3e0   :  { %v1314_v14 = vrot.slane %v1166_v53, %v3160_v1  ;;  %v1321_v25 = vrot.slane %v1166_v53, %v3163_v28  ;;  %v1830_v5 = vrot.slane %v1690_v31, %v3178_v63  ;;  %v1835_v21 = vrot.slane %v1691_v46, %v3181_v37 }
 0x3e1   :  { %v1061_v56 = vpop.xlane.xlu1 %1060  ;;  %v1063_v36 = vpop.xlane.xlu0 %1062 }
 0x3e2   :  { %v1684_v52 = vunpack.c.l.b16 %v1314_v14  ;;  %v1685_v13 = vunpack.c.l.b16 %v1321_v25  ;;  %v1167_v48 = vpack.c.bf16 %v1063_v36, %v1061_v56  ;;  %v1831_v0 = vsel %vm1752_vm10, %v1830_v5, %v1826_v29 }
 0x3e3   :  { %v1836_v40 = vsel %vm1759_vm11, %v1835_v21, %v1831_v0 }
 0x3e4   :  { %v1328_v6 = vrot.slane %v1167_v48, %v3160_v1  ;;  %v1335_v49 = vrot.slane %v1167_v48, %v3163_v28  ;;  %v1802_v18 = vrot.slane %v1684_v52, %v3172_v62  ;;  %v1806_v41 = vrot.slane %v1685_v13, %v3175_v4 }
 0x3e5   :  { %v1099_v2 = vpop.xlane.xlu1 %1098  ;;  %v1097_v9 = vpop.xlane.xlu0 %1096 }
 0x3e6   :  { %v1686_v58 = vunpack.c.l.b16 %v1328_v6  ;;  %v1687_v3 = vunpack.c.l.b16 %v1335_v49  ;;  %v1176_v23 = vpack.c.bf16 %v1099_v2, %v1097_v9  ;;  %v1807_v55 = vsel %vm1745_vm9, %v1806_v41, %v1802_v18 }
 0x3e8   :  { %v1811_v22 = vrot.slane %v1686_v58, %v3178_v63  ;;  %v1816_v34 = vrot.slane %v1687_v3, %v3181_v37  ;;  %v1454_v7 = vrot.slane %v1176_v23, %v3160_v1  ;;  %v1461_v24 = vrot.slane %v1176_v23, %v3163_v28 }
 0x3e9   :  { %v1103_v61 = vpop.xlane.xlu1 %1102  ;;  %v1101_v20 = vpop.xlane.xlu0 %1100 }
 0x3ea   :  { %v1812_v51 = vsel %vm1752_vm10, %v1811_v22, %v1807_v55  ;;  %v1704_v11 = vunpack.c.l.b16 %v1454_v7  ;;  %v1705_v47 = vunpack.c.l.b16 %v1461_v24  ;;  %v1177_v43 = vpack.c.bf16 %v1103_v61, %v1101_v20 }
 0x3eb   :  { %v1817_v17 = vsel %vm1759_vm11, %v1816_v34, %v1812_v51 }
 0x3ec   :  { %v2048_v59 = vsel %vm741_vm3, %v1817_v17, %v2047_v15  ;;  %v1468_v16 = vrot.slane %v1177_v43, %v3160_v1  ;;  %v1897_v54 = vrot.slane %v1704_v11, %v3172_v62  ;;  %v1901_v44 = vrot.slane %v1705_v47, %v3175_v4 }
 0x3ed   :  { %v1475_v32 = vrot.slane %v1177_v43, %v3163_v28  ;;  %v1073_v45 = vpop.xlane.xlu1 %1072  ;;  %v1075_v50 = vpop.xlane.xlu0 %1074  ;;  %v3254_v60 = vsel %vm743_vm4, %v1836_v40, %v2048_v59 }
 0x3ee   :  { %v1706_v10 = vunpack.c.l.b16 %v1468_v16  ;;  %v1902_v19 = vsel %vm1745_vm9, %v1901_v44, %v1897_v54  ;;  %v1170_v13 = vpack.c.bf16 %v1075_v50, %v1073_v45 }
 0x3ef   :  { %v1707_v12 = vunpack.c.l.b16 %v1475_v32 }
 0x3f0   :  { %v1906_v38 = vrot.slane %v1706_v10, %v3178_v63  ;;  %v1370_v6 = vrot.slane %v1170_v13, %v3160_v1  ;;  %v1377_v49 = vrot.slane %v1170_v13, %v3163_v28 }
 0x3f1   :  { %v1911_v57 = vrot.slane %v1707_v12, %v3181_v37  ;;  %v1077_v15 = vpop.xlane.xlu1 %1076  ;;  %v1079_v27 = vpop.xlane.xlu0 %1078 }
 0x3f2   :  { %v1907_v26 = vsel %vm1752_vm10, %v1906_v38, %v1902_v19  ;;  %v1171_v48 = vpack.c.bf16 %v1079_v27, %v1077_v15  ;;  %v1692_v3 = vunpack.c.l.b16 %v1370_v6  ;;  %v1693_v23 = vunpack.c.l.b16 %v1377_v49 }
 0x3f3   :  { %v3261_v8 = vsel %vm1759_vm11, %v1911_v57, %v1907_v26 }
 0x3f4   :  { %v1384_v18 = vrot.slane %v1171_v48, %v3160_v1  ;;  %v1391_v21 = vrot.slane %v1171_v48, %v3163_v28  ;;  %v1840_v61 = vrot.slane %v1692_v3, %v3172_v62  ;;  %v1844_v20 = vrot.slane %v1693_v23, %v3175_v4 }
 0x3f5   :  { %v1081_v53 = vpop.xlane.xlu1 %1080  ;;  %v1083_v30 = vpop.xlane.xlu0 %1082 }
 0x3f6   :  { %v1172_v46 = vpack.c.bf16 %v1083_v30, %v1081_v53  ;;  %v1694_v22 = vunpack.c.l.b16 %v1384_v18  ;;  %v1695_v11 = vunpack.c.l.b16 %v1391_v21  ;;  %v1845_v32 = vsel %vm1745_vm9, %v1844_v20, %v1840_v61 }
 0x3f8   :  { %v1398_v9 = vrot.slane %v1172_v46, %v3160_v1  ;;  %v1405_v58 = vrot.slane %v1172_v46, %v3163_v28  ;;  %v1849_v47 = vrot.slane %v1694_v22, %v3178_v63  ;;  %v1854_v38 = vrot.slane %v1695_v11, %v3181_v37 }
 0x3f9   :  { %v1085_v33 = vpop.xlane.xlu1 %1084  ;;  %v1087_v35 = vpop.xlane.xlu0 %1086 }
 0x3fa   :  { %v1173_v5 = vpack.c.bf16 %v1087_v35, %v1085_v33  ;;  %v1696_v24 = vunpack.c.l.b16 %v1398_v9  ;;  %v1697_v0 = vunpack.c.l.b16 %v1405_v58  ;;  %v1850_v12 = vsel %vm1752_vm10, %v1849_v47, %v1845_v32 }
 0x3fb   :  { %v1855_v9 = vsel %vm1759_vm11, %v1854_v38, %v1850_v12 }
 0x3fc   :  { %v1412_v29 = vrot.slane %v1173_v5, %v3160_v1  ;;  %v1419_v55 = vrot.slane %v1173_v5, %v3163_v28  ;;  %v1859_v16 = vrot.slane %v1696_v24, %v3172_v62  ;;  %v1863_v54 = vrot.slane %v1697_v0, %v3175_v4 }
 0x3fd   :  { %v1107_v14 = vpop.xlane.xlu1 %1106  ;;  %v1105_v25 = vpop.xlane.xlu0 %1104  ;;  %v2050_v0 = vsel %vm745_vm5, %v1855_v9, %v3254_v60 }
 0x3fe   :  { %v1698_v51 = vunpack.c.l.b16 %v1412_v29  ;;  %v1178_v40 = vpack.c.bf16 %v1107_v14, %v1105_v25  ;;  %v1699_v44 = vunpack.c.l.b16 %v1419_v55  ;;  %v1864_v33 = vsel %vm1745_vm9, %v1863_v54, %v1859_v16 }
 0x400   :  { %v1868_v45 = vrot.slane %v1698_v51, %v3178_v63  ;;  %v1482_v27 = vrot.slane %v1178_v40, %v3160_v1  ;;  %v1873_v35 = vrot.slane %v1699_v44, %v3181_v37  ;;  %v1489_v14 = vrot.slane %v1178_v40, %v3163_v28 }
 0x401   :  { %v1111_v31 = vpop.xlane.xlu1 %1110  ;;  %v1109_v56 = vpop.xlane.xlu0 %1108 }
 0x402   :  { %v1179_v19 = vpack.c.bf16 %v1111_v31, %v1109_v56  ;;  %v1869_v13 = vsel %vm1752_vm10, %v1868_v45, %v1864_v33  ;;  %v1708_v58 = vunpack.c.l.b16 %v1482_v27 }
 0x404   :  { %v1496_v56 = vrot.slane %v1179_v19, %v3160_v1  ;;  %v1503_v29 = vrot.slane %v1179_v19, %v3163_v28  ;;  %v1916_v47 = vrot.slane %v1708_v58, %v3172_v62 }
 0x405   :  { %v1115_v36 = vpop.xlane.xlu1 %1114  ;;  %v1113_v52 = vpop.xlane.xlu0 %1112 }
 0x406   :  { %v1180_v25 = vpack.c.bf16 %v1115_v36, %v1113_v52  ;;  %v1874_v52 = vsel %vm1759_vm11, %v1873_v35, %v1869_v13  ;;  %v1710_v55 = vunpack.c.l.b16 %v1496_v56  ;;  %v1711_v54 = vunpack.c.l.b16 %v1503_v29 }
 0x407   :  { %v2051_v11 = vsel %vm747_vm6, %v1874_v52, %v2050_v0 }
 0x408   :  { %v1517_v23 = vrot.slane %v1180_v25, %v3163_v28  ;;  %v1925_v45 = vrot.slane %v1710_v55, %v3178_v63 }
 0x409   :  { %v1119_v42 = vpop.xlane.xlu1 %1118  ;;  %v1117_v39 = vpop.xlane.xlu0 %1116 }
 0x40a   :  { %v1181_v48 = vpack.c.bf16 %v1119_v42, %v1117_v39  ;;  %v1709_v42 = vunpack.c.l.b16 %v1489_v14  ;;  %v1510_v39 = vrot.slane %v1180_v25, %v3160_v1 }
 0x40c   :  { %v1524_v21 = vrot.slane %v1181_v48, %v3160_v1  ;;  %v1712_v40 = vunpack.c.l.b16 %v1510_v39  ;;  %v1531_v60 = vrot.slane %v1181_v48, %v3163_v28 }
 0x40d   :  { %v3266_v41 = vpop.xlane.xlu1 %1130  ;;  %v3268_v2 = vpop.xlane.xlu0 %1128 }
 0x40e   :  { %v1714_v44 = vunpack.c.l.b16 %v1524_v21  ;;  %v1184_v19 = vpack.c.bf16 %v3266_v41, %v3268_v2 }
 0x410   :  { %v1944_v33 = vrot.slane %v1714_v44, %v3178_v63  ;;  %v1566_v48 = vrot.slane %v1184_v19, %v3160_v1 }
 0x411   :  { %v3274_v34 = vpop.xlane.xlu1 %1132  ;;  %v3276_v7 = vpop.xlane.xlu0 %1134 }
 0x412   :  { %v1185_v41 = vpack.c.bf16 %v3276_v7, %v3274_v34 }
 0x415   :  { %v1089_v43 = vpop.xlane.xlu1 %1088  ;;  %v1091_v17 = vpop.xlane.xlu0 %1090 }
 0x416   :  { %v1174_v59 = vpack.c.bf16 %v1091_v17, %v1089_v43  ;;  %v1920_v17 = vrot.slane %v1709_v42, %v3175_v4  ;;  %v1720_v42 = vunpack.c.l.b16 %v1566_v48 }
 0x418   :  { %v1426_v50 = vrot.slane %v1174_v59, %v3160_v1  ;;  %v1433_v10 = vrot.slane %v1174_v59, %v3163_v28  ;;  %v1713_v59 = vunpack.c.l.b16 %v1517_v23 }
 0x419   :  { %v1093_v57 = vpop.xlane.xlu1 %1092  ;;  %v1095_v15 = vpop.xlane.xlu0 %1094 }
 0x41a   :  { %v1700_v26 = vunpack.c.l.b16 %v1426_v50  ;;  %v1701_v53 = vunpack.c.l.b16 %v1433_v10  ;;  %v1175_v30 = vpack.c.bf16 %v1095_v15, %v1093_v57  ;;  %v1935_v15 = vrot.slane %v1712_v40, %v3172_v62 }
 0x41b   :  { %v1939_v27 = vrot.slane %v1713_v59, %v3175_v4  ;;  %v1973_v59 = vrot.slane %v1720_v42, %v3172_v62 }
 0x41c   :  { %v1440_v46 = vrot.slane %v1175_v30, %v3160_v1  ;;  %v1447_v31 = vrot.slane %v1175_v30, %v3163_v28  ;;  %v1878_v6 = vrot.slane %v1700_v26, %v3172_v62  ;;  %v1882_v49 = vrot.slane %v1701_v53, %v3175_v4 }
 0x41d   :  { %v1123_v5 = vpop.xlane.xlu1 %1122  ;;  %v1121_v18 = vpop.xlane.xlu0 %1120  ;;  %v1921_v26 = vsel %vm1745_vm9, %v1920_v17, %v1916_v47  ;;  %v1930_v53 = vrot.slane %v1711_v54, %v3181_v37  ;;  %v1715_v30 = vunpack.c.l.b16 %v1531_v60  ;;  %v1940_v56 = vsel %vm1745_vm9, %v1939_v27, %v1935_v15 }
 0x41e   :  { %v1702_v3 = vunpack.c.l.b16 %v1440_v46  ;;  %v1703_v36 = vunpack.c.l.b16 %v1447_v31  ;;  %v1883_v61 = vsel %vm1745_vm9, %v1882_v49, %v1878_v6  ;;  %v1182_v10 = vpack.c.bf16 %v1123_v5, %v1121_v18 }
 0x41f   :  { %v1926_v35 = vsel %vm1752_vm10, %v1925_v45, %v1921_v26  ;;  %v1573_v6 = vrot.slane %v1184_v19, %v3163_v28  ;;  %v1945_v34 = vsel %vm1752_vm10, %v1944_v33, %v1940_v56  ;;  %v1949_v7 = vrot.slane %v1715_v30, %v3181_v37 }
 0x420   :  { %v1887_v22 = vrot.slane %v1702_v3, %v3178_v63  ;;  %v1892_v24 = vrot.slane %v1703_v36, %v3181_v37  ;;  %v1538_v2 = vrot.slane %v1182_v10, %v3160_v1  ;;  %v1545_v14 = vrot.slane %v1182_v10, %v3163_v28 }
 0x421   :  { %v1127_v20 = vpop.xlane.xlu1 %1126  ;;  %v1125_v51 = vpop.xlane.xlu0 %1124  ;;  %v1931_v5 = vsel %vm1759_vm11, %v1930_v53, %v1926_v35  ;;  %v1580_v18 = vrot.slane %v1185_v41, %v3160_v1  ;;  %v1950_v55 = vsel %vm1759_vm11, %v1949_v7, %v1945_v34 }
 0x422   :  { %v1888_v43 = vsel %vm1752_vm10, %v1887_v22, %v1883_v61  ;;  %v1183_v57 = vpack.c.bf16 %v1127_v20, %v1125_v51  ;;  %v1716_v9 = vunpack.c.l.b16 %v1538_v2  ;;  %v1717_v58 = vunpack.c.l.b16 %v1545_v14 }
 0x423   :  { %v1893_v16 = vsel %vm1759_vm11, %v1892_v24, %v1888_v43  ;;  %v2053_v21 = vsel %vm737_vm1, %v1931_v5, %v3261_v8  ;;  %v1721_v22 = vunpack.c.l.b16 %v1573_v6  ;;  %v1587_v61 = vrot.slane %v1185_v41, %v3163_v28 }
 0x424   :  { %v2052_v32 = vsel %vm749_vm7, %v1893_v16, %v2051_v11  ;;  %v1552_v46 = vrot.slane %v1183_v57, %v3160_v1  ;;  %v1559_v3 = vrot.slane %v1183_v57, %v3163_v28  ;;  %v1722_v11 = vunpack.c.l.b16 %v1580_v18 }
 0x425   :  { %v2060_v50 = vpack.c.b16 %v2052_v32, %v2052_v32  ;;  %v1137_v12 = vpop.xlane.xlu1 %1136  ;;  %v1139_v38 = vpop.xlane.xlu0 %1138  ;;  %v1954_v47 = vrot.slane %v1716_v9, %v3172_v62  ;;  %v1958_v43 = vrot.slane %v1717_v58, %v3175_v4  ;;  %v1977_v10 = vrot.slane %v1721_v22, %v3175_v4 }
 0x426   :  { %v1186_v31 = vpack.c.bf16 %v1139_v38, %v1137_v12  ;;  %v1718_v39 = vunpack.c.l.b16 %v1552_v46  ;;  %v1719_v17 = vunpack.c.l.b16 %v1559_v3  ;;  %v1723_v12 = vunpack.c.l.b16 %v1587_v61 }
 0x427   :  { %2065 = vst.msk [vmem:[%s3414_s9] sm:$0xf] %vm2064_vm12, %v2060_v50  ;;  %v1982_v57 = vrot.slane %v1722_v11, %v3178_v63  ;;  %v1959_v15 = vsel %vm1745_vm9, %v1958_v43, %v1954_v47  ;;  %v1978_v5 = vsel %vm1745_vm9, %v1977_v10, %v1973_v59 }
 0x428   :  { %v1594_v23 = vrot.slane %v1186_v31, %v3160_v1  ;;  %v1601_v24 = vrot.slane %v1186_v31, %v3163_v28  ;;  %v1963_v16 = vrot.slane %v1718_v39, %v3178_v63  ;;  %v1968_v27 = vrot.slane %v1719_v17, %v3181_v37 }
 0x429   :  { %v1141_v25 = vpop.xlane.xlu1 %1140  ;;  %v1143_v13 = vpop.xlane.xlu0 %1142  ;;  %v1987_v9 = vrot.slane %v1723_v12, %v3181_v37 }
 0x42a   :  { %v1187_v49 = vpack.c.bf16 %v1143_v13, %v1141_v25  ;;  %v1724_v54 = vunpack.c.l.b16 %v1594_v23  ;;  %v1725_v44 = vunpack.c.l.b16 %v1601_v24  ;;  %v1964_v33 = vsel %vm1752_vm10, %v1963_v16, %v1959_v15 }
 0x42b   :  { %v1969_v42 = vsel %vm1759_vm11, %v1968_v27, %v1964_v33 }
 0x42c   :  { %v1608_v0 = vrot.slane %v1187_v49, %v3160_v1  ;;  %v1615_v32 = vrot.slane %v1187_v49, %v3163_v28  ;;  %v1992_v35 = vrot.slane %v1724_v54, %v3172_v62  ;;  %v1996_v14 = vrot.slane %v1725_v44, %v3175_v4 }
 0x42d   :  { %v1145_v36 = vpop.xlane.xlu1 %1144  ;;  %v1147_v52 = vpop.xlane.xlu0 %1146  ;;  %v2054_v49 = vsel %vm739_vm2, %v1950_v55, %v2053_v21 }
 0x42e   :  { %v1188_v29 = vpack.c.bf16 %v1147_v52, %v1145_v36  ;;  %v1726_v45 = vunpack.c.l.b16 %v1608_v0  ;;  %v1727_v25 = vunpack.c.l.b16 %v1615_v32  ;;  %v1983_v52 = vsel %vm1752_vm10, %v1982_v57, %v1978_v5 }
 0x42f   :  { %v1997_v39 = vsel %vm1745_vm9, %v1996_v14, %v1992_v35  ;;  %v1988_v17 = vsel %vm1759_vm11, %v1987_v9, %v1983_v52 }
 0x430   :  { %v1622_v20 = vrot.slane %v1188_v29, %v3160_v1  ;;  %v1629_v51 = vrot.slane %v1188_v29, %v3163_v28  ;;  %v2001_v13 = vrot.slane %v1726_v45, %v3178_v63  ;;  %v2006_v23 = vrot.slane %v1727_v25, %v3181_v37 }
 0x431   :  { %v1149_v8 = vpop.xlane.xlu1 %1148  ;;  %v1151_v40 = vpop.xlane.xlu0 %1150 }
 0x432   :  { %v1189_v60 = vpack.c.bf16 %v1151_v40, %v1149_v8  ;;  %v1728_v50 = vunpack.c.l.b16 %v1622_v20  ;;  %v1729_v38 = vunpack.c.l.b16 %v1629_v51  ;;  %v2002_v29 = vsel %vm1752_vm10, %v2001_v13, %v1997_v39 }
 0x433   :  { %v2055_v51 = vsel %vm741_vm3, %v1969_v42, %v2054_v49  ;;  %v2007_v47 = vsel %vm1759_vm11, %v2006_v23, %v2002_v29 }
 0x434   :  { %v1636_v19 = vrot.slane %v1189_v60, %v3160_v1  ;;  %v1643_v26 = vrot.slane %v1189_v60, %v3163_v28  ;;  %v2011_v48 = vrot.slane %v1728_v50, %v3172_v62  ;;  %v2015_v46 = vrot.slane %v1729_v38, %v3175_v4 }
 0x435   :  { %v1153_v53 = vpop.xlane.xlu1 %1152  ;;  %v1155_v30 = vpop.xlane.xlu0 %1154  ;;  %v2056_v40 = vsel %vm743_vm4, %v1988_v17, %v2055_v51 }
 0x436   :  { %v1730_v41 = vunpack.c.l.b16 %v1636_v19  ;;  %v1190_v2 = vpack.c.bf16 %v1155_v30, %v1153_v53  ;;  %v1731_v31 = vunpack.c.l.b16 %v1643_v26  ;;  %v2016_v21 = vsel %vm1745_vm9, %v2015_v46, %v2011_v48 }
 0x438   :  { %v1650_v56 = vrot.slane %v1190_v2, %v3160_v1  ;;  %v1657_v6 = vrot.slane %v1190_v2, %v3163_v28  ;;  %v2020_v34 = vrot.slane %v1730_v41, %v3178_v63  ;;  %v2025_v22 = vrot.slane %v1731_v31, %v3181_v37 }
 0x439   :  { %v1157_v7 = vpop.xlane.xlu1 %1156  ;;  %v1159_v18 = vpop.xlane.xlu0 %1158 }
 0x43a   :  { %v1732_v58 = vunpack.c.l.b16 %v1650_v56  ;;  %v1733_v3 = vunpack.c.l.b16 %v1657_v6  ;;  %v1191_v36 = vpack.c.bf16 %v1159_v18, %v1157_v7  ;;  %v2021_v0 = vsel %vm1752_vm10, %v2020_v34, %v2016_v21 }
 0x43b   :  { %v2026_v8 = vsel %vm1759_vm11, %v2025_v22, %v2021_v0 }
 0x43c   :  { %v1664_v24 = vrot.slane %v1191_v36, %v3160_v1  ;;  %v2030_v55 = vrot.slane %v1732_v58, %v3172_v62  ;;  %v2034_v61 = vrot.slane %v1733_v3, %v3175_v4  ;;  %v1671_v20 = vrot.slane %v1191_v36, %v3163_v28 }
 0x43d   :  { %v2057_v28 = vsel %vm745_vm5, %v2007_v47, %v2056_v40 }
 0x43e   :  { %v1734_v11 = vunpack.c.l.b16 %v1664_v24  ;;  %v1735_v43 = vunpack.c.l.b16 %v1671_v20  ;;  %v2035_v62 = vsel %vm1745_vm9, %v2034_v61, %v2030_v55  ;;  %v2058_v16 = vsel %vm747_vm6, %v2026_v8, %v2057_v28 }
 0x440   :  { %v2039_v1 = vrot.slane %v1734_v11, %v3178_v63  ;;  %v2044_v4 = vrot.slane %v1735_v43, %v3181_v37 }
 0x442   :  { %v2040_v59 = vsel %vm1752_vm10, %v2039_v1, %v2035_v62 }
 0x443   :  { %v2045_v54 = vsel %vm1759_vm11, %v2044_v4, %v2040_v59 }
 0x444   :  { %v2059_v60 = vsel %vm749_vm7, %v2045_v54, %v2058_v16 }
 0x445   :  { %v2061_v44 = vpack.c.b16 %v2059_v60, %v2059_v60 }
 0x447   :  { %2066 = vst.msk [vmem:[%s3414_s9 + $0x4] sm:$0xf] %vm2064_vm12, %v2061_v44 }

</bundles_post_ra>
